<compile_context>
chip_gen: v5e
topology: v5e:2x2
jax: 0.10.0
libtpu: 0.0.40
codegen_flags: <defaults>
</compile_context>

<pallas_src>
import jax
import jax.numpy as jnp
from jax.experimental import pallas as pl
from jax.experimental.pallas import tpu as pltpu

COUNTERS = 32          # city_attr['counters']
EDGES = 16             # city_attr['edges']
OUT_DIM = 3            # nn.Linear(1, 3)
OUT_COLS = EDGES * OUT_DIM   # 48 "real" output columns
OUT_PAD = 128          # lane-dense padded output width
BATCH = 512


def _elementwise_dtype():
    """bf16 bias/ReLU on v6e/v7x (bf16 VALU); f32 on v5e (no bf16 VALU)."""
    try:
        kind = jax.devices()[0].device_kind.lower()
    except Exception:
        return jnp.float32
    if "v6" in kind or "v7" in kind:
        return jnp.bfloat16
    return jnp.float32


def _round_up(n, m):
    return ((n + m - 1) // m) * m


def _pick_tile_b(batch):
    """Overhead/VMEM-driven tile size (not MXU-M driven).

    The kernel is fixed-overhead bound (~3.7 MFLOP); per-row VMEM is tiny
    (x f32 128 B + out f32 512 B, double-buffered ~1.3 KiB/row), so a single
    grid step handles any batch up to 4096 rows (~5 MiB, well under even the
    v5e 16 MiB default scoped-VMEM limit). Larger batches use 2048-row tiles,
    which also guarantees >=2 "parallel" tiles for v7x's second TensorCore.
    """
    if batch <= 4096:
        return max(_round_up(batch, 8), 8)
    return 2048


def mlp_kernel(x_ref, w1_ref, b1_ref, w2_ref, b2_ref, wc_ref, bc_ref, out_ref):
    # Elementwise (bias + ReLU) dtype is carried by the prepared biases:
    # bf16 on v6e/v7x, f32 on v5e.
    ew = b1_ref.dtype

    # hidden1 + ReLU: cast x on the vreg, bf16 MXU operands, f32 accumulate.
    h1 = jnp.dot(x_ref[...].astype(jnp.bfloat16), w1_ref[...],
                 preferred_element_type=jnp.float32).astype(ew)
    h1 = jnp.maximum(h1 + b1_ref[...], 0).astype(jnp.bfloat16)

    # hidden2 + ReLU
    h2 = jnp.dot(h1, w2_ref[...],
                 preferred_element_type=jnp.float32).astype(ew)
    h2 = jnp.maximum(h2 + b2_ref[...], 0).astype(jnp.bfloat16)

    # Fused predict + Linear(1,3), padded to 128 output lanes:
    # single lane-dense unmasked (tile_b, 128) f32 store.
    out_ref[...] = jnp.dot(h2, wc_ref[...],
                           preferred_element_type=jnp.float32) + bc_ref[...]


def prepare_params(params, *, ew_dtype=None):
    """One-time parameter preparation (hoisted out of the per-call path)."""
    w1, b1, w2, b2, wp, bp, wo, bo = params
    if ew_dtype is None:
        ew_dtype = _elementwise_dtype()

    # Fold predict(.) followed by Linear(1,3) into one matmul:
    #   W_comb[c, e*3+k] = Wp[c,e] * Wo[0,k]
    #   b_comb[e*3+k]    = bp[0,e] * Wo[0,k] + bo[0,k]
    w_comb = (wp[:, :, None] * wo[None, :, :]).reshape(COUNTERS, OUT_COLS)
    b_comb = (bp[0, :, None] * wo[0, None, :] + bo[0, None, :]).reshape(1, OUT_COLS)

    # Zero-pad 48 -> 128 output columns for lane-dense stores.
    w_comb = jnp.pad(w_comb, ((0, 0), (0, OUT_PAD - OUT_COLS)))
    b_comb = jnp.pad(b_comb, ((0, 0), (0, OUT_PAD - OUT_COLS)))

    return (
        w1.astype(jnp.bfloat16),
        b1.astype(ew_dtype),
        w2.astype(jnp.bfloat16),
        b2.astype(ew_dtype),
        w_comb.astype(jnp.bfloat16),
        b_comb.astype(jnp.float32),   # final bias add / output stay f32
    )


def mlp_forward(x, prepared, *, tile_b=None):
    """x: (B, COUNTERS) f32; prepared: output of prepare_params()."""
    w1_bf, b1_ew, w2_bf, b2_ew, wc_bf, bc_f32 = prepared
    B = x.shape[0]
    if tile_b is None:
        tile_b = _pick_tile_b(B)

    n_tiles = pl.cdiv(B, tile_b)
    b_pad = n_tiles * tile_b
    if b_pad != B:
        x = jnp.pad(x, ((0, b_pad - B), (0, 0)))

    resident = lambda i: (0, 0)  # weights/biases: same block every grid step

    out = pl.pallas_call(
        mlp_kernel,
        out_shape=jax.ShapeDtypeStruct((b_pad, OUT_PAD), jnp.float32),
        grid=(n_tiles,),
        in_specs=[
            pl.BlockSpec((tile_b, COUNTERS), lambda i: (i, 0)),   # x tile (f32)
            pl.BlockSpec((COUNTERS, COUNTERS), resident),         # W1 (bf16)
            pl.BlockSpec((1, COUNTERS), resident),                # b1
            pl.BlockSpec((COUNTERS, COUNTERS), resident),         # W2 (bf16)
            pl.BlockSpec((1, COUNTERS), resident),                # b2
            pl.BlockSpec((COUNTERS, OUT_PAD), resident),          # W_comb (bf16)
            pl.BlockSpec((1, OUT_PAD), resident),                 # b_comb (f32)
        ],
        out_specs=pl.BlockSpec((tile_b, OUT_PAD), lambda i: (i, 0)),
        compiler_params=pltpu.CompilerParams(
            dimension_semantics=("parallel",)),
    )(x, w1_bf, b1_ew, w2_bf, b2_ew, wc_bf, bc_f32)

    return out[:B, :OUT_COLS].reshape(B, EDGES, OUT_DIM)


def init_params(key):
    # Deterministic synthetic init, mimicking PyTorch uniform(-1/sqrt(fan_in), ...).
    ks = jax.random.split(key, 8)

    def unif(k, shape, fan_in):
        bound = 1.0 / jnp.sqrt(jnp.float32(fan_in))
        return jax.random.uniform(k, shape, jnp.float32, -bound, bound)

    # Weights stored pre-transposed as (in, out); biases as (1, out).
    w1 = unif(ks[0], (COUNTERS, COUNTERS), COUNTERS)
    b1 = unif(ks[1], (1, COUNTERS), COUNTERS)
    w2 = unif(ks[2], (COUNTERS, COUNTERS), COUNTERS)
    b2 = unif(ks[3], (1, COUNTERS), COUNTERS)
    wp = unif(ks[4], (COUNTERS, EDGES), COUNTERS)
    bp = unif(ks[5], (1, EDGES), COUNTERS)
    wo = unif(ks[6], (1, OUT_DIM), 1)   # nn.Linear(1, 3).weight transposed
    bo = unif(ks[7], (1, OUT_DIM), 1)
    return (w1, b1, w2, b2, wp, bp, wo, bo)


def mlp_reference_f32(x, params):
    """Pure-f32 PyTorch-semantics reference (unfused)."""
    w1, b1, w2, b2, wp, bp, wo, bo = params
    h1 = jnp.maximum(x @ w1 + b1, 0.0)
    h2 = jnp.maximum(h1 @ w2 + b2, 0.0)
    p = h2 @ wp + bp
    return p[:, :, None] * wo[None, :, :] + bo[None, :, :]


def mlp_reference_mirror(x, params, ew_dtype):
    """Reference mirroring the kernel's bf16-operand / fused-W_comb math."""
    w1, b1, w2, b2, wp, bp, wo, bo = params
    bf = jnp.bfloat16
    w_comb = (wp[:, :, None] * wo[None, :, :]).reshape(COUNTERS, OUT_COLS)
    b_comb = (bp[0, :, None] * wo[0, None, :] + bo[0, None, :]).reshape(1, OUT_COLS)
    h1 = jnp.dot(x.astype(bf), w1.astype(bf),
                 preferred_element_type=jnp.float32).astype(ew_dtype)
    h1 = jnp.maximum(h1 + b1.astype(ew_dtype), 0).astype(bf)
    h2 = jnp.dot(h1, w2.astype(bf),
                 preferred_element_type=jnp.float32).astype(ew_dtype)
    h2 = jnp.maximum(h2 + b2.astype(ew_dtype), 0).astype(bf)
    out = jnp.dot(h2, w_comb.astype(bf),
                  preferred_element_type=jnp.float32) + b_comb
    return out.reshape(x.shape[0], EDGES, OUT_DIM)


if __name__ == "__main__":
    key = jax.random.PRNGKey(0)
    kx, kp = jax.random.split(key)
    x = jax.random.normal(kx, (BATCH, COUNTERS), jnp.float32)
    params = init_params(kp)

    ew_dtype = _elementwise_dtype()
    prepared = prepare_params(params, ew_dtype=ew_dtype)   # hoisted, once

    fwd = jax.jit(lambda xx: mlp_forward(xx, prepared))
    out = jax.block_until_ready(fwd(x))
    assert out.shape == (BATCH, EDGES, OUT_DIM), out.shape

    # Tight check vs. a reference that mirrors the kernel math exactly.
    ref_mirror = mlp_reference_mirror(x, params, ew_dtype)
    assert jnp.allclose(out, ref_mirror, atol=2e-3, rtol=2e-3)

    # Looser check vs. the pure-f32 PyTorch-semantics reference
    # (bf16 matmul operands introduce ~1e-2-level deviation).
    ref_f32 = mlp_reference_f32(x, params)
    assert jnp.allclose(out, ref_f32, atol=5e-2, rtol=5e-2)

    print("KERNEL_OK")
</pallas_src>

<mosaic_0001>
module attributes {stable_mosaic.version = 11 : i64} {
  func.func @mlp_kernel(%arg0: i32, %arg1: memref<512x32xf32, #tpu.memory_space<vmem>>, %arg2: memref<32x32xbf16, #tpu.memory_space<vmem>>, %arg3: memref<1x32xf32, #tpu.memory_space<vmem>>, %arg4: memref<32x32xbf16, #tpu.memory_space<vmem>>, %arg5: memref<1x32xf32, #tpu.memory_space<vmem>>, %arg6: memref<32x128xbf16, #tpu.memory_space<vmem>>, %arg7: memref<1x128xf32, #tpu.memory_space<vmem>>, %arg8: memref<512x128xf32, #tpu.memory_space<vmem>>) attributes {dimension_semantics = [#tpu.dimension_semantics<parallel>], iteration_bounds = array<i64: 1>, scalar_prefetch = 0 : i64, scratch_operands = 0 : i64, tpu.core_type = #tpu.core_type<tc>, window_params = [{transform_indices = @transform_0, window_bounds = array<i64: 512, 32>}, {pipeline_mode = #tpu.pipeline_mode<synchronous>, transform_indices = @transform_1, window_bounds = array<i64: 32, 32>}, {pipeline_mode = #tpu.pipeline_mode<synchronous>, transform_indices = @transform_2, window_bounds = array<i64: 1, 32>}, {pipeline_mode = #tpu.pipeline_mode<synchronous>, transform_indices = @transform_3, window_bounds = array<i64: 32, 32>}, {pipeline_mode = #tpu.pipeline_mode<synchronous>, transform_indices = @transform_4, window_bounds = array<i64: 1, 32>}, {pipeline_mode = #tpu.pipeline_mode<synchronous>, transform_indices = @transform_5, window_bounds = array<i64: 32, 128>}, {pipeline_mode = #tpu.pipeline_mode<synchronous>, transform_indices = @transform_6, window_bounds = array<i64: 1, 128>}, {transform_indices = @transform_7, window_bounds = array<i64: 512, 128>}]} {
    %c0 = arith.constant 0 : index
    %c0_0 = arith.constant 0 : index
    %0 = vector.load %arg1[%c0, %c0_0] : memref<512x32xf32, #tpu.memory_space<vmem>>, vector<512x32xf32>
    %1 = arith.truncf %0 : vector<512x32xf32> to vector<512x32xbf16>
    %c0_1 = arith.constant 0 : index
    %c0_2 = arith.constant 0 : index
    %2 = vector.load %arg2[%c0_1, %c0_2] : memref<32x32xbf16, #tpu.memory_space<vmem>>, vector<32x32xbf16>
    %cst = arith.constant dense<0.000000e+00> : vector<512x32xf32>
    %3 = tpu.matmul %1, %2, %cst {dimension_numbers = #tpu.dot_dimension_numbers<[1], [0], [0], [1], [0, 0, 1, 1], [], []>} : vector<512x32xbf16>, vector<32x32xbf16>, vector<512x32xf32> -> vector<512x32xf32>
    %c0_3 = arith.constant 0 : index
    %c0_4 = arith.constant 0 : index
    %4 = vector.load %arg3[%c0_3, %c0_4] : memref<1x32xf32, #tpu.memory_space<vmem>>, vector<1x32xf32>
    %5 = vector.broadcast %4 : vector<1x32xf32> to vector<512x32xf32>
    %6 = arith.addf %3, %5 : vector<512x32xf32>
    %cst_5 = arith.constant 0.000000e+00 : f32
    %7 = vector.broadcast %cst_5 : f32 to vector<512x32xf32>
    %8 = arith.maximumf %6, %7 : vector<512x32xf32>
    %9 = arith.truncf %8 : vector<512x32xf32> to vector<512x32xbf16>
    %c0_6 = arith.constant 0 : index
    %c0_7 = arith.constant 0 : index
    %10 = vector.load %arg4[%c0_6, %c0_7] : memref<32x32xbf16, #tpu.memory_space<vmem>>, vector<32x32xbf16>
    %cst_8 = arith.constant dense<0.000000e+00> : vector<512x32xf32>
    %11 = tpu.matmul %9, %10, %cst_8 {dimension_numbers = #tpu.dot_dimension_numbers<[1], [0], [0], [1], [0, 0, 1, 1], [], []>} : vector<512x32xbf16>, vector<32x32xbf16>, vector<512x32xf32> -> vector<512x32xf32>
    %c0_9 = arith.constant 0 : index
    %c0_10 = arith.constant 0 : index
    %12 = vector.load %arg5[%c0_9, %c0_10] : memref<1x32xf32, #tpu.memory_space<vmem>>, vector<1x32xf32>
    %13 = vector.broadcast %12 : vector<1x32xf32> to vector<512x32xf32>
    %14 = arith.addf %11, %13 : vector<512x32xf32>
    %cst_11 = arith.constant 0.000000e+00 : f32
    %15 = vector.broadcast %cst_11 : f32 to vector<512x32xf32>
    %16 = arith.maximumf %14, %15 : vector<512x32xf32>
    %17 = arith.truncf %16 : vector<512x32xf32> to vector<512x32xbf16>
    %c0_12 = arith.constant 0 : index
    %c0_13 = arith.constant 0 : index
    %18 = vector.load %arg6[%c0_12, %c0_13] : memref<32x128xbf16, #tpu.memory_space<vmem>>, vector<32x128xbf16>
    %cst_14 = arith.constant dense<0.000000e+00> : vector<512x128xf32>
    %19 = tpu.matmul %17, %18, %cst_14 {dimension_numbers = #tpu.dot_dimension_numbers<[1], [0], [0], [1], [0, 0, 1, 1], [], []>} : vector<512x32xbf16>, vector<32x128xbf16>, vector<512x128xf32> -> vector<512x128xf32>
    %c0_15 = arith.constant 0 : index
    %c0_16 = arith.constant 0 : index
    %20 = vector.load %arg7[%c0_15, %c0_16] : memref<1x128xf32, #tpu.memory_space<vmem>>, vector<1x128xf32>
    %21 = vector.broadcast %20 : vector<1x128xf32> to vector<512x128xf32>
    %22 = arith.addf %19, %21 : vector<512x128xf32>
    %c0_17 = arith.constant 0 : index
    %c0_18 = arith.constant 0 : index
    %23 = vector.load %arg8[%c0_17, %c0_18] : memref<512x128xf32, #tpu.memory_space<vmem>>, vector<512x128xf32>
    tpu.vector_store %arg8[%c0_17, %c0_18], %22 {strides = array<i32>} : memref<512x128xf32, #tpu.memory_space<vmem>>, vector<512x128xf32>,
    return
  }
  func.func @transform_0(%arg0: i32) -> (i32, i32) {
    %c0_i32 = arith.constant 0 : i32
    %c0_i32_0 = arith.constant 0 : i32
    return %arg0, %c0_i32 : i32, i32
  }
  func.func @transform_1(%arg0: i32) -> (i32, i32) {
    %c0_i32 = arith.constant 0 : i32
    %c0_i32_0 = arith.constant 0 : i32
    %c0_i32_1 = arith.constant 0 : i32
    return %c0_i32, %c0_i32_0 : i32, i32
  }
  func.func @transform_2(%arg0: i32) -> (i32, i32) {
    %c0_i32 = arith.constant 0 : i32
    %c0_i32_0 = arith.constant 0 : i32
    %c0_i32_1 = arith.constant 0 : i32
    return %c0_i32, %c0_i32_0 : i32, i32
  }
  func.func @transform_3(%arg0: i32) -> (i32, i32) {
    %c0_i32 = arith.constant 0 : i32
    %c0_i32_0 = arith.constant 0 : i32
    %c0_i32_1 = arith.constant 0 : i32
    return %c0_i32, %c0_i32_0 : i32, i32
  }
  func.func @transform_4(%arg0: i32) -> (i32, i32) {
    %c0_i32 = arith.constant 0 : i32
    %c0_i32_0 = arith.constant 0 : i32
    %c0_i32_1 = arith.constant 0 : i32
    return %c0_i32, %c0_i32_0 : i32, i32
  }
  func.func @transform_5(%arg0: i32) -> (i32, i32) {
    %c0_i32 = arith.constant 0 : i32
    %c0_i32_0 = arith.constant 0 : i32
    %c0_i32_1 = arith.constant 0 : i32
    return %c0_i32, %c0_i32_0 : i32, i32
  }
  func.func @transform_6(%arg0: i32) -> (i32, i32) {
    %c0_i32 = arith.constant 0 : i32
    %c0_i32_0 = arith.constant 0 : i32
    %c0_i32_1 = arith.constant 0 : i32
    return %c0_i32, %c0_i32_0 : i32, i32
  }
  func.func @transform_7(%arg0: i32) -> (i32, i32) {
    %c0_i32 = arith.constant 0 : i32
    %c0_i32_0 = arith.constant 0 : i32
    return %arg0, %c0_i32 : i32, i32
  }
}

</mosaic_0001>

<bundles_post_ra>
// kernel: _lambda_.1
= control target key start
LH: loop header
LB: loop body
LE: loop exit
PB: predicated region body
PF: predicated region fallthrough
CT: control target
= control target key end

     0   :  { %vm143_vm0 = vcmask 261120   ;;  %s2117_s1 = inlined_call_operand.vmem [shape: bf16[32,32], index: 1, kind: input, shape index: {}]   ;;  %s2118_s0 = inlined_call_operand.vmem [shape: f32[512,32], index: 0, kind: input, shape index: {}]   ;;  %s2119_s2 = inlined_call_operand.vmem [shape: f32[1,32], index: 2, kind: input, shape index: {}]   ;;  %s2120_s3 = inlined_call_operand.vmem [shape: bf16[32,32], index: 3, kind: input, shape index: {}]   ;;  %s2121_s4 = inlined_call_operand.vmem [shape: f32[1,32], index: 4, kind: input, shape index: {}]   ;;  %s2122_s5 = inlined_call_operand.vmem [shape: bf16[32,128], index: 5, kind: input, shape index: {}]   ;;  %s2123_s6 = inlined_call_operand.vmem [shape: f32[1,128], index: 6, kind: input, shape index: {}]   ;;  %s2124_s7 = inlined_call_operand.vmem [shape: f32[512,128], index: 7, kind: output, shape index: {}]  }
   0x1   :  { %v1360_v0 = vld [vmem:[%s2117_s1 + $0x8] sm:$0xff]  ;;  %v1359_v1 = vld [vmem:[%s2117_s1] sm:$0xff]  ;;  %v29_v5 = vld [vmem:[%s2118_s0 + $0x10] sm:$0xff] }
   0x2   :  { %246 = vmatpush.bf16.msra.mxu0 %v1360_v0  ;;  %v27_v2 = vld [vmem:[%s2118_s0] sm:$0xff]  ;;  %v28_v3 = vld [vmem:[%s2118_s0 + $0x8] sm:$0xff]  ;;  %1365 = vmatpush.bf16.msra.mxu3 %v1360_v0  ;;  %v30_v6 = vld [vmem:[%s2118_s0 + $0x18] sm:$0xff] }
   0x3   :  { %v91_v4 = vpack.c.bf16 %v28_v3, %v27_v2  ;;  %v92_v7 = vpack.c.bf16 %v30_v6, %v29_v5  ;;  %v31_v8 = vld [vmem:[%s2118_s0 + $0x20] sm:$0xff]  ;;  %v32_v9 = vld [vmem:[%s2118_s0 + $0x28] sm:$0xff]  ;;  %v33_v11 = vld [vmem:[%s2118_s0 + $0x30] sm:$0xff] }
   0x4   :  { %v93_v10 = vpack.c.bf16 %v32_v9, %v31_v8  ;;  %v34_v12 = vld [vmem:[%s2118_s0 + $0x38] sm:$0xff]  ;;  %v35_v14 = vld [vmem:[%s2118_s0 + $0x40] sm:$0xff]  ;;  %v36_v15 = vld [vmem:[%s2118_s0 + $0x48] sm:$0xff] }
   0x5   :  { %v94_v13 = vpack.c.bf16 %v34_v12, %v33_v11  ;;  %v95_v16 = vpack.c.bf16 %v36_v15, %v35_v14  ;;  %v37_v17 = vld [vmem:[%s2118_s0 + $0x50] sm:$0xff]  ;;  %v38_v18 = vld [vmem:[%s2118_s0 + $0x58] sm:$0xff]  ;;  %v39_v20 = vld [vmem:[%s2118_s0 + $0x60] sm:$0xff] }
   0x6   :  { %247 = vmatpush.bf16.msra.mxu0 %v1359_v1  ;;  %1366 = vmatpush.bf16.msra.mxu3 %v1359_v1  ;;  %v96_v19 = vpack.c.bf16 %v38_v18, %v37_v17  ;;  %v40_v21 = vld [vmem:[%s2118_s0 + $0x68] sm:$0xff]  ;;  %v1361_v24 = vld [vmem:[%s2120_s3] sm:$0xff]  ;;  %v41_v25 = vld [vmem:[%s2118_s0 + $0x70] sm:$0xff] }
   0x7   :  { %v97_v22 = vpack.c.bf16 %v40_v21, %v39_v20  ;;  %v1362_v23 = vld [vmem:[%s2120_s3 + $0x8] sm:$0xff]  ;;  %v42_v26 = vld [vmem:[%s2118_s0 + $0x78] sm:$0xff]  ;;  %v43_v28 = vld [vmem:[%s2118_s0 + $0x80] sm:$0xff] }
   0x8   :  { %627 = vmatpush.bf16.msra.mxu1 %v1362_v23  ;;  %v98_v27 = vpack.c.bf16 %v42_v26, %v41_v25  ;;  %v44_v29 = vld [vmem:[%s2118_s0 + $0x88] sm:$0xff]  ;;  %v1493_v32 = vld [vmem:[%s2119_s2] ss:$0 sm:$0xff]  ;;  %v45_v38 = vld [vmem:[%s2118_s0 + $0x90] sm:$0xff] }
   0x9   :  { %1247 = vmatmul.msk.bf16.vlgmr.msra.gmra.mxu0 %vm143_vm0, %v91_v4  ;;  %v99_v30 = vpack.c.bf16 %v44_v29, %v43_v28  ;;  %v46_v39 = vld [vmem:[%s2118_s0 + $0x98] sm:$0xff]  ;;  %v47_v48 = vld [vmem:[%s2118_s0 + $0xa0] sm:$0xff]  ;;  %v48_v49 = vld [vmem:[%s2118_s0 + $0xa8] sm:$0xff] }
   0xa   :  { %1367 = vmatpush.bf16.msrb.mxu3 %v1362_v23  ;;  %v100_v41 = vpack.c.bf16 %v46_v39, %v45_v38  ;;  %v101_v51 = vpack.c.bf16 %v48_v49, %v47_v48  ;;  %v49_v58 = vld [vmem:[%s2118_s0 + $0xb0] sm:$0xff]  ;;  %v50_v59 = vld [vmem:[%s2118_s0 + $0xb8] sm:$0xff]  ;;  %v75_v4 = vld [vmem:[%s2118_s0 + $0x180] sm:$0xff] }
   0xb   :  { %v102_v61 = vpack.c.bf16 %v50_v59, %v49_v58  ;;  %v76_v5 = vld [vmem:[%s2118_s0 + $0x188] sm:$0xff]  ;;  %v51_v6 = vld [vmem:[%s2118_s0 + $0xc0] sm:$0xff]  ;;  %v77_v17 = vld [vmem:[%s2118_s0 + $0x190] sm:$0xff] }
   0xc   :  { %628 = vmatpush.bf16.msra.mxu1 %v1361_v24  ;;  %v115_v8 = vpack.c.bf16 %v76_v5, %v75_v4  ;;  %v78_v18 = vld [vmem:[%s2118_s0 + $0x198] sm:$0xff]  ;;  %v59_v59 = vld [vmem:[%s2118_s0 + $0x100] sm:$0xff] }
   0xd   :  { %v54_v20 = vld [vmem:[%s2118_s0 + $0xd8] sm:$0xff]  ;;  %v116_v21 = vpack.c.bf16 %v78_v18, %v77_v17 }
   0xe   :  { %1368 = vmatpush.bf16.msrb.mxu3 %v1361_v24 }
   0xf   :  { %1271 = vmatmul.msk.bf16.vlgmr.msra.gmra.mxu3 %vm143_vm0, %v115_v8  ;;  %v61_v8 = vld [vmem:[%s2118_s0 + $0x110] sm:$0xff] }
  0x19   :  { %1248 = vmatmul.msk.bf16.gmra.mxu0 %vm143_vm0, %v92_v7  ;;  %v52_v7 = vld [vmem:[%s2118_s0 + $0xc8] sm:$0xff] }
  0x1f   :  { %1272 = vmatmul.msk.bf16.gmra.mxu3 %vm143_vm0, %v116_v21 }
  0x29   :  { %1249 = vmatmul.msk.bf16.gmra.mxu0 %vm143_vm0, %v93_v10  ;;  %v103_v10 = vpack.c.bf16 %v52_v7, %v51_v6 }
  0x39   :  { %1250 = vmatmul.msk.bf16.gmra.mxu0 %vm143_vm0, %v94_v13 }
  0x49   :  { %1251 = vmatmul.msk.bf16.gmra.mxu0 %vm143_vm0, %v95_v16 }
  0x59   :  { %1252 = vmatmul.msk.bf16.gmra.mxu0 %vm143_vm0, %v96_v19  ;;  %v53_v19 = vld [vmem:[%s2118_s0 + $0xd0] sm:$0xff] }
  0x5a   :  { %v104_v23 = vpack.c.bf16 %v54_v20, %v53_v19 }
  0x69   :  { %1253 = vmatmul.msk.bf16.gmra.mxu0 %vm143_vm0, %v97_v22 }
  0x79   :  { %1254 = vmatmul.msk.bf16.gmra.mxu0 %vm143_vm0, %v98_v27 }
  0x86   :  { %v249_v31 = vpop.f32.mrf.mxu0 }
  0x87   :  { %v250_v33 = vadd.f32 %v1493_v32, %v249_v31  ;;  %v80_v31 = vld [vmem:[%s2118_s0 + $0x1a8] sm:$0xff] }
  0x89   :  { %1255 = vmatmul.msk.bf16.gmra.mxu0 %vm143_vm0, %v99_v30  ;;  %v409_v36 = vmax.f32 %v250_v33, 0.0  ;;  %v79_v30 = vld [vmem:[%s2118_s0 + $0x1a0] sm:$0xff] }
  0x8a   :  { %v55_v33 = vld [vmem:[%s2118_s0 + $0xe0] sm:$0xff] }
  0x8e   :  { %v251_v34 = vpop.f32.mrf.mxu0 }
  0x8f   :  { %v252_v35 = vadd.f32 %v1493_v32, %v251_v34  ;;  %v56_v34 = vld [vmem:[%s2118_s0 + $0xe8] sm:$0xff] }
  0x91   :  { %v410_v37 = vmax.f32 %v252_v35, 0.0  ;;  %v117_v35 = vpack.c.bf16 %v80_v31, %v79_v30  ;;  %v64_v31 = vld [vmem:[%s2118_s0 + $0x128] sm:$0xff] }
  0x93   :  { %v473_v40 = vpack.c.bf16 %v410_v37, %v409_v36  ;;  %1273 = vmatmul.msk.bf16.gmra.mxu3 %vm143_vm0, %v117_v35  ;;  %v105_v37 = vpack.c.bf16 %v56_v34, %v55_v33  ;;  %v87_v33 = vld [vmem:[%s2118_s0 + $0x1e0] sm:$0xff]  ;;  %v88_v34 = vld [vmem:[%s2118_s0 + $0x1e8] sm:$0xff] }
  0x95   :  { %1287 = vmatmul.msk.bf16.vlgmr.msra.gmra.mxu1 %vm143_vm0, %v473_v40 }
  0x96   :  { %v254_v42 = vpop.f32.mrf.mxu0 }
  0x97   :  { %v255_v43 = vadd.f32 %v1493_v32, %v254_v42 }
  0x99   :  { %1256 = vmatmul.msk.bf16.gmra.mxu0 %vm143_vm0, %v100_v41  ;;  %v411_v46 = vmax.f32 %v255_v43, 0.0 }
  0x9e   :  { %v256_v44 = vpop.f32.mrf.mxu0 }
  0x9f   :  { %v257_v45 = vadd.f32 %v1493_v32, %v256_v44  ;;  %v57_v44 = vld [vmem:[%s2118_s0 + $0xf0] sm:$0xff] }
  0xa1   :  { %v412_v47 = vmax.f32 %v257_v45, 0.0  ;;  %v58_v45 = vld [vmem:[%s2118_s0 + $0xf8] sm:$0xff] }
  0xa3   :  { %v474_v50 = vpack.c.bf16 %v412_v47, %v411_v46  ;;  %v81_v46 = vld [vmem:[%s2118_s0 + $0x1b0] sm:$0xff]  ;;  %v82_v47 = vld [vmem:[%s2118_s0 + $0x1b8] sm:$0xff] }
  0xa4   :  { %v118_v49 = vpack.c.bf16 %v82_v47, %v81_v46 }
  0xa5   :  { %1288 = vmatmul.msk.bf16.gmra.mxu1 %vm143_vm0, %v474_v50  ;;  %v106_v50 = vpack.c.bf16 %v58_v45, %v57_v44 }
  0xa6   :  { %v259_v52 = vpop.f32.mrf.mxu0  ;;  %1274 = vmatmul.msk.bf16.gmra.mxu3 %vm143_vm0, %v118_v49 }
  0xa7   :  { %v260_v53 = vadd.f32 %v1493_v32, %v259_v52  ;;  %v1364_v52 = vld [vmem:[%s2122_s5 + $0x8] sm:$0xff] }
  0xa8   :  { %1008 = vmatpush.bf16.msra.mxu2 %v1364_v52  ;;  %1369 = vmatpush.bf16.msra.mxu3 %v1364_v52  ;;  %v66_v52 = vld [vmem:[%s2118_s0 + $0x138] sm:$0xff] }
  0xa9   :  { %1257 = vmatmul.msk.bf16.gmra.mxu0 %vm143_vm0, %v101_v51  ;;  %v413_v56 = vmax.f32 %v260_v53, 0.0  ;;  %v1363_v53 = vld [vmem:[%s2122_s5] sm:$0xff] }
  0xac   :  { %1009 = vmatpush.bf16.msra.mxu2 %v1363_v53  ;;  %1370 = vmatpush.bf16.msra.mxu3 %v1363_v53  ;;  %v89_v53 = vld [vmem:[%s2118_s0 + $0x1f0] sm:$0xff] }
  0xae   :  { %v261_v54 = vpop.f32.mrf.mxu0 }
  0xaf   :  { %v262_v55 = vadd.f32 %v1493_v32, %v261_v54 }
  0xb1   :  { %v414_v57 = vmax.f32 %v262_v55, 0.0 }
  0xb3   :  { %v475_v60 = vpack.c.bf16 %v414_v57, %v413_v56 }
  0xb5   :  { %1289 = vmatmul.msk.bf16.gmra.mxu1 %vm143_vm0, %v475_v60  ;;  %v60_v60 = vld [vmem:[%s2118_s0 + $0x108] sm:$0xff] }
  0xb6   :  { %v264_v62 = vpop.f32.mrf.mxu0 }
  0xb7   :  { %v265_v63 = vadd.f32 %v1493_v32, %v264_v62  ;;  %v84_v62 = vld [vmem:[%s2118_s0 + $0x1c8] sm:$0xff] }
  0xb9   :  { %1258 = vmatmul.msk.bf16.gmra.mxu0 %vm143_vm0, %v102_v61  ;;  %v415_v2 = vmax.f32 %v265_v63, 0.0  ;;  %v83_v61 = vld [vmem:[%s2118_s0 + $0x1c0] sm:$0xff] }
  0xbe   :  { %v266_v0 = vpop.f32.mrf.mxu0 }
  0xbf   :  { %v267_v1 = vadd.f32 %v1493_v32, %v266_v0  ;;  %v119_v0 = vpack.c.bf16 %v84_v62, %v83_v61 }
  0xc1   :  { %v416_v3 = vmax.f32 %v267_v1, 0.0  ;;  %v107_v1 = vpack.c.bf16 %v60_v60, %v59_v59  ;;  %1275 = vmatmul.msk.bf16.gmra.mxu3 %vm143_vm0, %v119_v0 }
  0xc3   :  { %v476_v9 = vpack.c.bf16 %v416_v3, %v415_v2 }
  0xc5   :  { %1290 = vmatmul.msk.bf16.gmra.mxu1 %vm143_vm0, %v476_v9 }
  0xc6   :  { %v269_v11 = vpop.f32.mrf.mxu0 }
  0xc7   :  { %v270_v12 = vadd.f32 %v1493_v32, %v269_v11  ;;  %v85_v11 = vld [vmem:[%s2118_s0 + $0x1d0] sm:$0xff] }
  0xc9   :  { %1259 = vmatmul.msk.bf16.gmra.mxu0 %vm143_vm0, %v103_v10  ;;  %v417_v15 = vmax.f32 %v270_v12, 0.0  ;;  %v62_v10 = vld [vmem:[%s2118_s0 + $0x118] sm:$0xff] }
  0xca   :  { %v86_v12 = vld [vmem:[%s2118_s0 + $0x1d8] sm:$0xff] }
  0xce   :  { %v271_v13 = vpop.f32.mrf.mxu0 }
  0xcf   :  { %v272_v14 = vadd.f32 %v1493_v32, %v271_v13 }
  0xd1   :  { %v418_v16 = vmax.f32 %v272_v14, 0.0  ;;  %v120_v14 = vpack.c.bf16 %v86_v12, %v85_v11  ;;  %v369_v12 = vpop.f32.mrf.mxu3 }
  0xd3   :  { %v477_v22 = vpack.c.bf16 %v418_v16, %v417_v15  ;;  %v1634_v15 = vld [vmem:[%s2121_s4] ss:$0 sm:$0xff]  ;;  %v108_v16 = vpack.c.bf16 %v62_v10, %v61_v8  ;;  %1276 = vmatmul.msk.bf16.gmra.mxu3 %vm143_vm0, %v120_v14  ;;  %v68_v8 = vld [vmem:[%s2118_s0 + $0x148] sm:$0xff] }
  0xd5   :  { %1291 = vmatmul.msk.bf16.gmra.mxu1 %vm143_vm0, %v477_v22 }
  0xd6   :  { %v274_v24 = vpop.f32.mrf.mxu0 }
  0xd7   :  { %v275_v25 = vadd.f32 %v1493_v32, %v274_v24 }
  0xd9   :  { %1260 = vmatmul.msk.bf16.gmra.mxu0 %vm143_vm0, %v104_v23  ;;  %v419_v28 = vmax.f32 %v275_v25, 0.0 }
  0xde   :  { %v276_v26 = vpop.f32.mrf.mxu0 }
  0xdf   :  { %v277_v27 = vadd.f32 %v1493_v32, %v276_v26 }
  0xe1   :  { %v420_v29 = vmax.f32 %v277_v27, 0.0 }
  0xe3   :  { %v478_v36 = vpack.c.bf16 %v420_v29, %v419_v28  ;;  %v63_v29 = vld [vmem:[%s2118_s0 + $0x120] sm:$0xff] }
  0xe5   :  { %1292 = vmatmul.msk.bf16.gmra.mxu1 %vm143_vm0, %v478_v36  ;;  %v121_v36 = vpack.c.bf16 %v88_v34, %v87_v33 }
  0xe6   :  { %v279_v38 = vpop.f32.mrf.mxu0 }
  0xe7   :  { %v280_v39 = vadd.f32 %v1493_v32, %v279_v38  ;;  %1277 = vmatmul.msk.bf16.gmra.mxu3 %vm143_vm0, %v121_v36 }
  0xe9   :  { %1261 = vmatmul.msk.bf16.gmra.mxu0 %vm143_vm0, %v105_v37  ;;  %v421_v42 = vmax.f32 %v280_v39, 0.0  ;;  %v109_v37 = vpack.c.bf16 %v64_v31, %v63_v29  ;;  %v70_v31 = vld [vmem:[%s2118_s0 + $0x158] sm:$0xff] }
  0xee   :  { %v281_v40 = vpop.f32.mrf.mxu0 }
  0xef   :  { %v282_v41 = vadd.f32 %v1493_v32, %v281_v40 }
  0xf1   :  { %v422_v43 = vmax.f32 %v282_v41, 0.0 }
  0xf3   :  { %v479_v48 = vpack.c.bf16 %v422_v43, %v421_v42 }
  0xf5   :  { %1293 = vmatmul.msk.bf16.gmra.mxu1 %vm143_vm0, %v479_v48 }
  0xf6   :  { %v284_v51 = vpop.f32.mrf.mxu0 }
  0xf7   :  { %v285_v54 = vadd.f32 %v1493_v32, %v284_v51 }
  0xf9   :  { %1262 = vmatmul.msk.bf16.gmra.mxu0 %vm143_vm0, %v106_v50  ;;  %v423_v57 = vmax.f32 %v285_v54, 0.0  ;;  %v65_v50 = vld [vmem:[%s2118_s0 + $0x130] sm:$0xff]  ;;  %v90_v54 = vld [vmem:[%s2118_s0 + $0x1f8] sm:$0xff] }
  0xfe   :  { %v286_v55 = vpop.f32.mrf.mxu0 }
  0xff   :  { %v287_v56 = vadd.f32 %v1493_v32, %v286_v55 }
 0x101   :  { %v424_v58 = vmax.f32 %v287_v56, 0.0  ;;  %v122_v56 = vpack.c.bf16 %v90_v54, %v89_v53 }
 0x103   :  { %v480_v63 = vpack.c.bf16 %v424_v58, %v423_v57  ;;  %v110_v57 = vpack.c.bf16 %v66_v52, %v65_v50  ;;  %1278 = vmatmul.msk.bf16.gmra.mxu3 %vm143_vm0, %v122_v56  ;;  %v72_v56 = vld [vmem:[%s2118_s0 + $0x168] sm:$0xff] }
 0x105   :  { %1294 = vmatmul.msk.bf16.gmra.mxu1 %vm143_vm0, %v480_v63 }
 0x106   :  { %v289_v2 = vpop.f32.mrf.mxu0 }
 0x107   :  { %v290_v3 = vadd.f32 %v1493_v32, %v289_v2 }
 0x109   :  { %1263 = vmatmul.msk.bf16.gmra.mxu0 %vm143_vm0, %v107_v1  ;;  %v425_v6 = vmax.f32 %v290_v3, 0.0 }
 0x10e   :  { %v291_v4 = vpop.f32.mrf.mxu0 }
 0x10f   :  { %v292_v5 = vadd.f32 %v1493_v32, %v291_v4 }
 0x111   :  { %v426_v7 = vmax.f32 %v292_v5, 0.0 }
 0x112   :  { %v630_v9 = vpop.f32.mrf.mxu1 }
 0x113   :  { %v481_v13 = vpack.c.bf16 %v426_v7, %v425_v6  ;;  %v631_v18 = vadd.f32 %v1634_v15, %v630_v9  ;;  %v67_v7 = vld [vmem:[%s2118_s0 + $0x140] sm:$0xff] }
 0x114   :  { %v111_v10 = vpack.c.bf16 %v68_v8, %v67_v7 }
 0x115   :  { %1295 = vmatmul.msk.bf16.gmra.mxu1 %vm143_vm0, %v481_v13  ;;  %v790_v21 = vmax.f32 %v631_v18, 0.0 }
 0x116   :  { %v294_v17 = vpop.f32.mrf.mxu0 }
 0x117   :  { %v295_v22 = vadd.f32 %v1493_v32, %v294_v17 }
 0x119   :  { %1264 = vmatmul.msk.bf16.gmra.mxu0 %vm143_vm0, %v108_v16  ;;  %v427_v27 = vmax.f32 %v295_v22, 0.0 }
 0x11a   :  { %v632_v19 = vpop.f32.mrf.mxu1 }
 0x11b   :  { %v633_v20 = vadd.f32 %v1634_v15, %v632_v19 }
 0x11d   :  { %v791_v23 = vmax.f32 %v633_v20, 0.0  ;;  %v370_v20 = vadd.f32 %v1493_v32, %v369_v12 }
 0x11e   :  { %v296_v24 = vpop.f32.mrf.mxu0 }
 0x11f   :  { %v297_v25 = vadd.f32 %v1493_v32, %v296_v24  ;;  %v854_v26 = vpack.c.bf16 %v791_v23, %v790_v21  ;;  %v371_v24 = vpop.f32.mrf.mxu3 }
 0x121   :  { %v428_v28 = vmax.f32 %v297_v25, 0.0  ;;  %1327 = vmatmul.msk.bf16.vlgmr.msra.gmra.mxu2 %vm143_vm0, %v854_v26 }
 0x122   :  { %v635_v30 = vpop.f32.mrf.mxu1 }
 0x123   :  { %v482_v35 = vpack.c.bf16 %v428_v28, %v427_v27  ;;  %v636_v39 = vadd.f32 %v1634_v15, %v635_v30  ;;  %v457_v27 = vmax.f32 %v370_v20, 0.0  ;;  %v372_v28 = vadd.f32 %v1493_v32, %v371_v24  ;;  %v69_v30 = vld [vmem:[%s2118_s0 + $0x150] sm:$0xff] }
 0x125   :  { %1296 = vmatmul.msk.bf16.gmra.mxu1 %vm143_vm0, %v482_v35  ;;  %v792_v42 = vmax.f32 %v636_v39, 0.0  ;;  %v458_v34 = vmax.f32 %v372_v28, 0.0  ;;  %v112_v35 = vpack.c.bf16 %v70_v31, %v69_v30 }
 0x126   :  { %v299_v38 = vpop.f32.mrf.mxu0 }
 0x127   :  { %v300_v43 = vadd.f32 %v1493_v32, %v299_v38  ;;  %v497_v36 = vpack.c.bf16 %v458_v34, %v457_v27  ;;  %v374_v38 = vpop.f32.mrf.mxu3 }
 0x129   :  { %1265 = vmatmul.msk.bf16.gmra.mxu0 %vm143_vm0, %v109_v37  ;;  %v429_v48 = vmax.f32 %v300_v43, 0.0  ;;  %1311 = vmatmul.msk.bf16.vlgmr.msrb.gmra.mxu3 %vm143_vm0, %v497_v36 }
 0x12a   :  { %v637_v40 = vpop.f32.mrf.mxu1 }
 0x12b   :  { %v638_v41 = vadd.f32 %v1634_v15, %v637_v40 }
 0x12d   :  { %v793_v44 = vmax.f32 %v638_v41, 0.0 }
 0x12e   :  { %v301_v45 = vpop.f32.mrf.mxu0 }
 0x12f   :  { %v302_v46 = vadd.f32 %v1493_v32, %v301_v45  ;;  %v855_v47 = vpack.c.bf16 %v793_v44, %v792_v42  ;;  %v375_v45 = vadd.f32 %v1493_v32, %v374_v38 }
 0x131   :  { %v430_v49 = vmax.f32 %v302_v46, 0.0  ;;  %1328 = vmatmul.msk.bf16.gmra.mxu2 %vm143_vm0, %v855_v47  ;;  %v459_v52 = vmax.f32 %v375_v45, 0.0 }
 0x132   :  { %v640_v51 = vpop.f32.mrf.mxu1 }
 0x133   :  { %v483_v55 = vpack.c.bf16 %v430_v49, %v429_v48  ;;  %v641_v59 = vadd.f32 %v1634_v15, %v640_v51  ;;  %v376_v49 = vpop.f32.mrf.mxu3 }
 0x134   :  { %v377_v53 = vadd.f32 %v1493_v32, %v376_v49 }
 0x135   :  { %1297 = vmatmul.msk.bf16.gmra.mxu1 %vm143_vm0, %v483_v55  ;;  %v794_v62 = vmax.f32 %v641_v59, 0.0  ;;  %v71_v55 = vld [vmem:[%s2118_s0 + $0x160] sm:$0xff] }
 0x136   :  { %v304_v58 = vpop.f32.mrf.mxu0  ;;  %v113_v59 = vpack.c.bf16 %v72_v56, %v71_v55 }
 0x137   :  { %v305_v63 = vadd.f32 %v1493_v32, %v304_v58  ;;  %v460_v58 = vmax.f32 %v377_v53, 0.0 }
 0x139   :  { %1266 = vmatmul.msk.bf16.gmra.mxu0 %vm143_vm0, %v110_v57  ;;  %v431_v4 = vmax.f32 %v305_v63, 0.0 }
 0x13a   :  { %v642_v60 = vpop.f32.mrf.mxu1 }
 0x13b   :  { %v643_v61 = vadd.f32 %v1634_v15, %v642_v60  ;;  %v498_v60 = vpack.c.bf16 %v460_v58, %v459_v52 }
 0x13d   :  { %v795_v0 = vmax.f32 %v643_v61, 0.0  ;;  %1312 = vmatmul.msk.bf16.gmra.mxu3 %vm143_vm0, %v498_v60 }
 0x13e   :  { %v306_v1 = vpop.f32.mrf.mxu0 }
 0x13f   :  { %v307_v2 = vadd.f32 %v1493_v32, %v306_v1  ;;  %v856_v3 = vpack.c.bf16 %v795_v0, %v794_v62  ;;  %v379_v62 = vpop.f32.mrf.mxu3 }
 0x141   :  { %v432_v5 = vmax.f32 %v307_v2, 0.0  ;;  %1329 = vmatmul.msk.bf16.gmra.mxu2 %vm143_vm0, %v856_v3 }
 0x142   :  { %v645_v6 = vpop.f32.mrf.mxu1 }
 0x143   :  { %v484_v9 = vpack.c.bf16 %v432_v5, %v431_v4  ;;  %v646_v13 = vadd.f32 %v1634_v15, %v645_v6  ;;  %v380_v5 = vadd.f32 %v1493_v32, %v379_v62 }
 0x145   :  { %1298 = vmatmul.msk.bf16.gmra.mxu1 %vm143_vm0, %v484_v9  ;;  %v796_v17 = vmax.f32 %v646_v13, 0.0  ;;  %v461_v12 = vmax.f32 %v380_v5, 0.0 }
 0x146   :  { %v309_v11 = vpop.f32.mrf.mxu0 }
 0x147   :  { %v310_v18 = vadd.f32 %v1493_v32, %v309_v11  ;;  %v381_v9 = vpop.f32.mrf.mxu3 }
 0x148   :  { %v382_v13 = vadd.f32 %v1493_v32, %v381_v9 }
 0x149   :  { %1267 = vmatmul.msk.bf16.gmra.mxu0 %vm143_vm0, %v111_v10  ;;  %v433_v25 = vmax.f32 %v310_v18, 0.0 }
 0x14a   :  { %v647_v14 = vpop.f32.mrf.mxu1 }
 0x14b   :  { %v648_v16 = vadd.f32 %v1634_v15, %v647_v14 }
 0x14d   :  { %v797_v19 = vmax.f32 %v648_v16, 0.0  ;;  %v73_v16 = vld [vmem:[%s2118_s0 + $0x170] sm:$0xff] }
 0x14e   :  { %v311_v21 = vpop.f32.mrf.mxu0 }
 0x14f   :  { %v312_v22 = vadd.f32 %v1493_v32, %v311_v21  ;;  %v857_v23 = vpack.c.bf16 %v797_v19, %v796_v17  ;;  %v74_v17 = vld [vmem:[%s2118_s0 + $0x178] sm:$0xff]  ;;  %v462_v19 = vmax.f32 %v382_v13, 0.0 }
 0x150   :  { %v114_v20 = vpack.c.bf16 %v74_v17, %v73_v16  ;;  %v1767_v17 = vld [vmem:[%s2123_s6] ss:$0 sm:$0xff] }
 0x151   :  { %v434_v26 = vmax.f32 %v312_v22, 0.0  ;;  %1330 = vmatmul.msk.bf16.gmra.mxu2 %vm143_vm0, %v857_v23  ;;  %v499_v21 = vpack.c.bf16 %v462_v19, %v461_v12  ;;  %v384_v23 = vpop.f32.mrf.mxu3 }
 0x152   :  { %v650_v29 = vpop.f32.mrf.mxu1  ;;  %v385_v30 = vadd.f32 %v1493_v32, %v384_v23 }
 0x153   :  { %v485_v33 = vpack.c.bf16 %v434_v26, %v433_v25  ;;  %v651_v39 = vadd.f32 %v1634_v15, %v650_v29  ;;  %1313 = vmatmul.msk.bf16.gmra.mxu3 %vm143_vm0, %v499_v21 }
 0x154   :  { %v463_v38 = vmax.f32 %v385_v30, 0.0 }
 0x155   :  { %1299 = vmatmul.msk.bf16.gmra.mxu1 %vm143_vm0, %v485_v33  ;;  %v798_v42 = vmax.f32 %v651_v39, 0.0 }
 0x156   :  { %v314_v37 = vpop.f32.mrf.mxu0 }
 0x157   :  { %v315_v43 = vadd.f32 %v1493_v32, %v314_v37 }
 0x159   :  { %1268 = vmatmul.msk.bf16.gmra.mxu0 %vm143_vm0, %v112_v35  ;;  %v435_v50 = vmax.f32 %v315_v43, 0.0  ;;  %v386_v35 = vpop.f32.mrf.mxu3 }
 0x15a   :  { %v652_v40 = vpop.f32.mrf.mxu1  ;;  %v387_v39 = vadd.f32 %v1493_v32, %v386_v35 }
 0x15b   :  { %v653_v41 = vadd.f32 %v1634_v15, %v652_v40 }
 0x15d   :  { %v799_v44 = vmax.f32 %v653_v41, 0.0 }
 0x15e   :  { %v316_v46 = vpop.f32.mrf.mxu0 }
 0x15f   :  { %v317_v47 = vadd.f32 %v1493_v32, %v316_v46  ;;  %v858_v48 = vpack.c.bf16 %v799_v44, %v798_v42  ;;  %v464_v42 = vmax.f32 %v387_v39, 0.0 }
 0x161   :  { %v436_v51 = vmax.f32 %v317_v47, 0.0  ;;  %1331 = vmatmul.msk.bf16.gmra.mxu2 %vm143_vm0, %v858_v48  ;;  %v500_v43 = vpack.c.bf16 %v464_v42, %v463_v38  ;;  %v389_v45 = vpop.f32.mrf.mxu3 }
 0x162   :  { %v655_v54 = vpop.f32.mrf.mxu1  ;;  %v390_v52 = vadd.f32 %v1493_v32, %v389_v45 }
 0x163   :  { %v486_v57 = vpack.c.bf16 %v436_v51, %v435_v50  ;;  %v656_v63 = vadd.f32 %v1634_v15, %v655_v54  ;;  %1314 = vmatmul.msk.bf16.gmra.mxu3 %vm143_vm0, %v500_v43 }
 0x165   :  { %1300 = vmatmul.msk.bf16.gmra.mxu1 %vm143_vm0, %v486_v57  ;;  %v800_v2 = vmax.f32 %v656_v63, 0.0 }
 0x166   :  { %v319_v61 = vpop.f32.mrf.mxu0 }
 0x167   :  { %v320_v3 = vadd.f32 %v1493_v32, %v319_v61 }
 0x169   :  { %1269 = vmatmul.msk.bf16.gmra.mxu0 %vm143_vm0, %v113_v59  ;;  %v437_v10 = vmax.f32 %v320_v3, 0.0  ;;  %v391_v56 = vpop.f32.mrf.mxu3  ;;  %v465_v59 = vmax.f32 %v390_v52, 0.0 }
 0x16a   :  { %v657_v0 = vpop.f32.mrf.mxu1  ;;  %v392_v60 = vadd.f32 %v1493_v32, %v391_v56 }
 0x16b   :  { %v658_v1 = vadd.f32 %v1634_v15, %v657_v0 }
 0x16c   :  { %v466_v63 = vmax.f32 %v392_v60, 0.0 }
 0x16d   :  { %v801_v4 = vmax.f32 %v658_v1, 0.0 }
 0x16e   :  { %v321_v6 = vpop.f32.mrf.mxu0  ;;  %v501_v0 = vpack.c.bf16 %v466_v63, %v465_v59 }
 0x16f   :  { %v322_v7 = vadd.f32 %v1493_v32, %v321_v6  ;;  %v859_v8 = vpack.c.bf16 %v801_v4, %v800_v2 }
 0x171   :  { %v438_v11 = vmax.f32 %v322_v7, 0.0  ;;  %1332 = vmatmul.msk.bf16.gmra.mxu2 %vm143_vm0, %v859_v8  ;;  %v394_v2 = vpop.f32.mrf.mxu3 }
 0x172   :  { %v660_v14 = vpop.f32.mrf.mxu1  ;;  %v395_v9 = vadd.f32 %v1493_v32, %v394_v2 }
 0x173   :  { %v487_v18 = vpack.c.bf16 %v438_v11, %v437_v10  ;;  %v661_v24 = vadd.f32 %v1634_v15, %v660_v14  ;;  %1315 = vmatmul.msk.bf16.gmra.mxu3 %vm143_vm0, %v501_v0 }
 0x175   :  { %1301 = vmatmul.msk.bf16.gmra.mxu1 %vm143_vm0, %v487_v18  ;;  %v802_v27 = vmax.f32 %v661_v24, 0.0  ;;  %v467_v18 = vmax.f32 %v395_v9, 0.0 }
 0x176   :  { %v324_v22 = vpop.f32.mrf.mxu0 }
 0x177   :  { %v325_v28 = vadd.f32 %v1493_v32, %v324_v22 }
 0x179   :  { %1270 = vmatmul.msk.bf16.gmra.mxu0 %vm143_vm0, %v114_v20  ;;  %v439_v36 = vmax.f32 %v325_v28, 0.0  ;;  %v396_v13 = vpop.f32.mrf.mxu3 }
 0x17a   :  { %v662_v25 = vpop.f32.mrf.mxu1  ;;  %v397_v19 = vadd.f32 %v1493_v32, %v396_v13 }
 0x17b   :  { %v663_v26 = vadd.f32 %v1634_v15, %v662_v25 }
 0x17c   :  { %v468_v22 = vmax.f32 %v397_v19, 0.0 }
 0x17d   :  { %v803_v29 = vmax.f32 %v663_v26, 0.0 }
 0x17e   :  { %v326_v31 = vpop.f32.mrf.mxu0  ;;  %v502_v25 = vpack.c.bf16 %v468_v22, %v467_v18 }
 0x17f   :  { %v327_v33 = vadd.f32 %v1493_v32, %v326_v31  ;;  %v860_v34 = vpack.c.bf16 %v803_v29, %v802_v27 }
 0x181   :  { %v440_v37 = vmax.f32 %v327_v33, 0.0  ;;  %1333 = vmatmul.msk.bf16.gmra.mxu2 %vm143_vm0, %v860_v34  ;;  %v399_v28 = vpop.f32.mrf.mxu3 }
 0x182   :  { %v665_v40 = vpop.f32.mrf.mxu1 }
 0x183   :  { %v488_v41 = vpack.c.bf16 %v440_v37, %v439_v36  ;;  %v666_v46 = vadd.f32 %v1634_v15, %v665_v40  ;;  %1316 = vmatmul.msk.bf16.gmra.mxu3 %vm143_vm0, %v502_v25  ;;  %v400_v37 = vadd.f32 %v1493_v32, %v399_v28 }
 0x185   :  { %1302 = vmatmul.msk.bf16.gmra.mxu1 %vm143_vm0, %v488_v41  ;;  %v804_v49 = vmax.f32 %v666_v46, 0.0 }
 0x186   :  { %v329_v44 = vpop.f32.mrf.mxu0 }
 0x187   :  { %v330_v50 = vadd.f32 %v1493_v32, %v329_v44  ;;  %v469_v44 = vmax.f32 %v400_v37, 0.0 }
 0x189   :  { %v441_v57 = vmax.f32 %v330_v50, 0.0  ;;  %v401_v41 = vpop.f32.mrf.mxu3 }
 0x18a   :  { %v667_v47 = vpop.f32.mrf.mxu1  ;;  %v402_v45 = vadd.f32 %v1493_v32, %v401_v41 }
 0x18b   :  { %v668_v48 = vadd.f32 %v1634_v15, %v667_v47 }
 0x18d   :  { %v805_v51 = vmax.f32 %v668_v48, 0.0  ;;  %v470_v48 = vmax.f32 %v402_v45, 0.0 }
 0x18e   :  { %v331_v53 = vpop.f32.mrf.mxu0 }
 0x18f   :  { %v332_v54 = vadd.f32 %v1493_v32, %v331_v53  ;;  %v861_v55 = vpack.c.bf16 %v805_v51, %v804_v49  ;;  %v503_v51 = vpack.c.bf16 %v470_v48, %v469_v44 }
 0x191   :  { %v442_v58 = vmax.f32 %v332_v54, 0.0  ;;  %1334 = vmatmul.msk.bf16.gmra.mxu2 %vm143_vm0, %v861_v55  ;;  %v404_v54 = vpop.f32.mrf.mxu3 }
 0x192   :  { %v670_v61 = vpop.f32.mrf.mxu1 }
 0x193   :  { %v489_v62 = vpack.c.bf16 %v442_v58, %v441_v57  ;;  %v671_v3 = vadd.f32 %v1634_v15, %v670_v61  ;;  %1317 = vmatmul.msk.bf16.gmra.mxu3 %vm143_vm0, %v503_v51 }
 0x195   :  { %1303 = vmatmul.msk.bf16.gmra.mxu1 %vm143_vm0, %v489_v62  ;;  %v806_v6 = vmax.f32 %v671_v3, 0.0  ;;  %v405_v62 = vadd.f32 %v1493_v32, %v404_v54 }
 0x196   :  { %v334_v1 = vpop.f32.mrf.mxu0 }
 0x197   :  { %v335_v7 = vadd.f32 %v1493_v32, %v334_v1 }
 0x199   :  { %v443_v14 = vmax.f32 %v335_v7, 0.0  ;;  %v406_v2 = vpop.f32.mrf.mxu3 }
 0x19a   :  { %v672_v4 = vpop.f32.mrf.mxu1 }
 0x19b   :  { %v673_v5 = vadd.f32 %v1634_v15, %v672_v4 }
 0x19d   :  { %v807_v8 = vmax.f32 %v673_v5, 0.0  ;;  %v471_v5 = vmax.f32 %v405_v62, 0.0 }
 0x19e   :  { %v336_v10 = vpop.f32.mrf.mxu0 }
 0x19f   :  { %v337_v11 = vadd.f32 %v1493_v32, %v336_v10  ;;  %v862_v12 = vpack.c.bf16 %v807_v8, %v806_v6  ;;  %v407_v6 = vadd.f32 %v1493_v32, %v406_v2 }
 0x1a1   :  { %v444_v16 = vmax.f32 %v337_v11, 0.0  ;;  %1335 = vmatmul.msk.bf16.gmra.mxu2 %vm143_vm0, %v862_v12  ;;  %v472_v9 = vmax.f32 %v407_v6, 0.0 }
 0x1a2   :  { %v675_v20 = vpop.f32.mrf.mxu1 }
 0x1a3   :  { %v490_v21 = vpack.c.bf16 %v444_v16, %v443_v14  ;;  %v676_v27 = vadd.f32 %v1634_v15, %v675_v20  ;;  %v504_v12 = vpack.c.bf16 %v472_v9, %v471_v5 }
 0x1a4   :  { %v1011_v23 = vpop.f32.mrf.mxu2 }
 0x1a5   :  { %v1012_v24 = vadd.f32 %v1767_v17, %v1011_v23  ;;  %1304 = vmatmul.msk.bf16.gmra.mxu1 %vm143_vm0, %v490_v21  ;;  %v808_v31 = vmax.f32 %v676_v27, 0.0  ;;  %1318 = vmatmul.msk.bf16.gmra.mxu3 %vm143_vm0, %v504_v12 }
 0x1a6   :  { %v339_v26 = vpop.f32.mrf.mxu0 }
 0x1a7   :  { %1171 = vst [vmem:[%s2124_s7] sm:$0xff] %v1012_v24  ;;  %v340_v34 = vadd.f32 %v1493_v32, %v339_v26 }
 0x1a9   :  { %v445_v42 = vmax.f32 %v340_v34, 0.0 }
 0x1aa   :  { %v677_v29 = vpop.f32.mrf.mxu1 }
 0x1ab   :  { %v678_v30 = vadd.f32 %v1634_v15, %v677_v29 }
 0x1ac   :  { %v1013_v33 = vpop.f32.mrf.mxu2  ;;  %v750_v37 = vpop.f32.mrf.mxu3 }
 0x1ad   :  { %v809_v35 = vmax.f32 %v678_v30, 0.0  ;;  %v1014_v36 = vadd.f32 %v1767_v17, %v1013_v33 }
 0x1ae   :  { %v341_v38 = vpop.f32.mrf.mxu0 }
 0x1af   :  { %1172 = vst [vmem:[%s2124_s7 + $0x8] sm:$0xff] %v1014_v36  ;;  %v342_v39 = vadd.f32 %v1493_v32, %v341_v38  ;;  %v863_v40 = vpack.c.bf16 %v809_v35, %v808_v31 }
 0x1b1   :  { %v446_v43 = vmax.f32 %v342_v39, 0.0  ;;  %1336 = vmatmul.msk.bf16.gmra.mxu2 %vm143_vm0, %v863_v40 }
 0x1b2   :  { %v680_v46 = vpop.f32.mrf.mxu1 }
 0x1b3   :  { %v491_v47 = vpack.c.bf16 %v446_v43, %v445_v42  ;;  %v681_v53 = vadd.f32 %v1634_v15, %v680_v46 }
 0x1b4   :  { %v1016_v49 = vpop.f32.mrf.mxu2  ;;  %v752_v51 = vpop.f32.mrf.mxu3 }
 0x1b5   :  { %v1017_v50 = vadd.f32 %v1767_v17, %v1016_v49  ;;  %1305 = vmatmul.msk.bf16.gmra.mxu1 %vm143_vm0, %v491_v47  ;;  %v810_v57 = vmax.f32 %v681_v53, 0.0  ;;  %v751_v47 = vadd.f32 %v1634_v15, %v750_v37  ;;  %v753_v54 = vadd.f32 %v1634_v15, %v752_v51 }
 0x1b6   :  { %v344_v52 = vpop.f32.mrf.mxu0 }
 0x1b7   :  { %1173 = vst [vmem:[%s2124_s7 + $0x10] sm:$0xff] %v1017_v50  ;;  %v345_v59 = vadd.f32 %v1493_v32, %v344_v52  ;;  %v838_v53 = vmax.f32 %v751_v47, 0.0 }
 0x1b9   :  { %v447_v3 = vmax.f32 %v345_v59, 0.0 }
 0x1ba   :  { %v682_v55 = vpop.f32.mrf.mxu1 }
 0x1bb   :  { %v683_v56 = vadd.f32 %v1634_v15, %v682_v55 }
 0x1bc   :  { %v1018_v58 = vpop.f32.mrf.mxu2 }
 0x1bd   :  { %v811_v60 = vmax.f32 %v683_v56, 0.0  ;;  %v1019_v61 = vadd.f32 %v1767_v17, %v1018_v58 }
 0x1be   :  { %v346_v63 = vpop.f32.mrf.mxu0 }
 0x1bf   :  { %1174 = vst [vmem:[%s2124_s7 + $0x18] sm:$0xff] %v1019_v61  ;;  %v347_v0 = vadd.f32 %v1493_v32, %v346_v63  ;;  %v864_v1 = vpack.c.bf16 %v811_v60, %v810_v57  ;;  %v839_v57 = vmax.f32 %v753_v54, 0.0 }
 0x1c0   :  { %v755_v62 = vpop.f32.mrf.mxu3 }
 0x1c1   :  { %v448_v4 = vmax.f32 %v347_v0, 0.0  ;;  %1337 = vmatmul.msk.bf16.gmra.mxu2 %vm143_vm0, %v864_v1  ;;  %v878_v59 = vpack.c.bf16 %v839_v57, %v838_v53 }
 0x1c2   :  { %v685_v7 = vpop.f32.mrf.mxu1 }
 0x1c3   :  { %v492_v8 = vpack.c.bf16 %v448_v4, %v447_v3  ;;  %v686_v14 = vadd.f32 %v1634_v15, %v685_v7  ;;  %1351 = vmatmul.msk.bf16.vlgmr.msra.gmra.mxu3 %vm143_vm0, %v878_v59 }
 0x1c4   :  { %v1021_v10 = vpop.f32.mrf.mxu2 }
 0x1c5   :  { %v1022_v11 = vadd.f32 %v1767_v17, %v1021_v10  ;;  %1306 = vmatmul.msk.bf16.gmra.mxu1 %vm143_vm0, %v492_v8  ;;  %v812_v20 = vmax.f32 %v686_v14, 0.0  ;;  %v756_v8 = vadd.f32 %v1634_v15, %v755_v62 }
 0x1c6   :  { %v349_v13 = vpop.f32.mrf.mxu0 }
 0x1c7   :  { %1175 = vst [vmem:[%s2124_s7 + $0x20] sm:$0xff] %v1022_v11  ;;  %v350_v21 = vadd.f32 %v1493_v32, %v349_v13  ;;  %v840_v14 = vmax.f32 %v756_v8, 0.0 }
 0x1c8   :  { %v757_v12 = vpop.f32.mrf.mxu3 }
 0x1c9   :  { %v449_v27 = vmax.f32 %v350_v21, 0.0 }
 0x1ca   :  { %v687_v16 = vpop.f32.mrf.mxu1 }
 0x1cb   :  { %v688_v18 = vadd.f32 %v1634_v15, %v687_v16  ;;  %v758_v16 = vadd.f32 %v1634_v15, %v757_v12 }
 0x1cc   :  { %v1023_v19 = vpop.f32.mrf.mxu2 }
 0x1cd   :  { %v813_v22 = vmax.f32 %v688_v18, 0.0  ;;  %v1024_v23 = vadd.f32 %v1767_v17, %v1023_v19 }
 0x1ce   :  { %v351_v24 = vpop.f32.mrf.mxu0 }
 0x1cf   :  { %1176 = vst [vmem:[%s2124_s7 + $0x28] sm:$0xff] %v1024_v23  ;;  %v352_v25 = vadd.f32 %v1493_v32, %v351_v24  ;;  %v865_v26 = vpack.c.bf16 %v813_v22, %v812_v20  ;;  %v841_v20 = vmax.f32 %v758_v16, 0.0 }
 0x1d1   :  { %v450_v28 = vmax.f32 %v352_v25, 0.0  ;;  %1338 = vmatmul.msk.bf16.gmra.mxu2 %vm143_vm0, %v865_v26 }
 0x1d2   :  { %v690_v29 = vpop.f32.mrf.mxu1 }
 0x1d3   :  { %v493_v30 = vpack.c.bf16 %v450_v28, %v449_v27  ;;  %v691_v35 = vadd.f32 %v1634_v15, %v690_v29  ;;  %v1374_v28 = vld [vmem:[%s2119_s2] ss:$0 sm:$0xff] }
 0x1d4   :  { %v1026_v31 = vpop.f32.mrf.mxu2 }
 0x1d5   :  { %v1027_v33 = vadd.f32 %v1767_v17, %v1026_v31  ;;  %1307 = vmatmul.msk.bf16.gmra.mxu1 %vm143_vm0, %v493_v30  ;;  %v814_v40 = vmax.f32 %v691_v35, 0.0 }
 0x1d6   :  { %v354_v34 = vpop.f32.mrf.mxu0  ;;  %v760_v24 = vpop.f32.mrf.mxu3 }
 0x1d7   :  { %1177 = vst [vmem:[%s2124_s7 + $0x30] sm:$0xff] %v1027_v33  ;;  %v355_v41 = vadd.f32 %v1493_v32, %v354_v34 }
 0x1d9   :  { %v451_v48 = vmax.f32 %v355_v41, 0.0 }
 0x1da   :  { %v692_v36 = vpop.f32.mrf.mxu1 }
 0x1db   :  { %v693_v38 = vadd.f32 %v1634_v15, %v692_v36  ;;  %v761_v36 = vadd.f32 %v1634_v15, %v760_v24 }
 0x1dc   :  { %v1028_v39 = vpop.f32.mrf.mxu2 }
 0x1dd   :  { %v815_v42 = vmax.f32 %v693_v38, 0.0  ;;  %v1029_v43 = vadd.f32 %v1767_v17, %v1028_v39 }
 0x1de   :  { %v356_v44 = vpop.f32.mrf.mxu0 }
 0x1df   :  { %v866_v45 = vpack.c.bf16 %v815_v42, %v814_v40  ;;  %1178 = vst [vmem:[%s2124_s7 + $0x38] sm:$0xff] %v1029_v43  ;;  %v357_v46 = vadd.f32 %v1493_v32, %v356_v44  ;;  %v762_v40 = vpop.f32.mrf.mxu3  ;;  %v842_v42 = vmax.f32 %v761_v36, 0.0 }
 0x1e0   :  { %v763_v43 = vadd.f32 %v1634_v15, %v762_v40 }
 0x1e1   :  { %v452_v49 = vmax.f32 %v357_v46, 0.0  ;;  %1339 = vmatmul.msk.bf16.gmra.mxu2 %vm143_vm0, %v866_v45 }
 0x1e2   :  { %v695_v50 = vpop.f32.mrf.mxu1  ;;  %v843_v46 = vmax.f32 %v763_v43, 0.0 }
 0x1e3   :  { %v494_v52 = vpack.c.bf16 %v452_v49, %v451_v48  ;;  %v696_v60 = vadd.f32 %v1634_v15, %v695_v50 }
 0x1e4   :  { %v1031_v55 = vpop.f32.mrf.mxu2  ;;  %v880_v47 = vpack.c.bf16 %v843_v46, %v842_v42 }
 0x1e5   :  { %v1032_v56 = vadd.f32 %v1767_v17, %v1031_v55  ;;  %1308 = vmatmul.msk.bf16.gmra.mxu1 %vm143_vm0, %v494_v52  ;;  %v816_v1 = vmax.f32 %v696_v60, 0.0 }
 0x1e6   :  { %v359_v58 = vpop.f32.mrf.mxu0 }
 0x1e7   :  { %1179 = vst [vmem:[%s2124_s7 + $0x40] sm:$0xff] %v1032_v56  ;;  %v360_v2 = vadd.f32 %v1493_v32, %v359_v58  ;;  %v765_v50 = vpop.f32.mrf.mxu3 }
 0x1e8   :  { %v766_v57 = vadd.f32 %v1634_v15, %v765_v50 }
 0x1e9   :  { %v453_v9 = vmax.f32 %v360_v2, 0.0 }
 0x1ea   :  { %v697_v61 = vpop.f32.mrf.mxu1  ;;  %v844_v60 = vmax.f32 %v766_v57, 0.0 }
 0x1eb   :  { %v698_v63 = vadd.f32 %v1634_v15, %v697_v61 }
 0x1ec   :  { %v1033_v0 = vpop.f32.mrf.mxu2 }
 0x1ed   :  { %v817_v3 = vmax.f32 %v698_v63, 0.0  ;;  %v1034_v4 = vadd.f32 %v1767_v17, %v1033_v0 }
 0x1ee   :  { %v361_v5 = vpop.f32.mrf.mxu0 }
 0x1ef   :  { %v867_v6 = vpack.c.bf16 %v817_v3, %v816_v1  ;;  %1180 = vst [vmem:[%s2124_s7 + $0x48] sm:$0xff] %v1034_v4  ;;  %v362_v7 = vadd.f32 %v1493_v32, %v361_v5  ;;  %v879_v32 = vpack.c.bf16 %v841_v20, %v840_v14  ;;  %v767_v59 = vpop.f32.mrf.mxu3 }
 0x1f0   :  { %v768_v61 = vadd.f32 %v1634_v15, %v767_v59 }
 0x1f1   :  { %v454_v10 = vmax.f32 %v362_v7, 0.0  ;;  %1340 = vmatmul.msk.bf16.gmra.mxu2 %vm143_vm0, %v867_v6  ;;  %1352 = vmatmul.msk.bf16.gmra.mxu3 %vm143_vm0, %v879_v32 }
 0x1f2   :  { %v700_v11 = vpop.f32.mrf.mxu1  ;;  %v845_v0 = vmax.f32 %v768_v61, 0.0 }
 0x1f3   :  { %v495_v13 = vpack.c.bf16 %v454_v10, %v453_v9  ;;  %v701_v22 = vadd.f32 %v1634_v15, %v700_v11 }
 0x1f4   :  { %v1036_v18 = vpop.f32.mrf.mxu2  ;;  %v881_v1 = vpack.c.bf16 %v845_v0, %v844_v60 }
 0x1f5   :  { %v1037_v19 = vadd.f32 %v1767_v17, %v1036_v18  ;;  %1309 = vmatmul.msk.bf16.gmra.mxu1 %vm143_vm0, %v495_v13  ;;  %v818_v27 = vmax.f32 %v701_v22, 0.0 }
 0x1f6   :  { %v364_v21 = vpop.f32.mrf.mxu0 }
 0x1f7   :  { %1181 = vst [vmem:[%s2124_s7 + $0x50] sm:$0xff] %v1037_v19  ;;  %v365_v29 = vadd.f32 %v1374_v28, %v364_v21  ;;  %v770_v4 = vpop.f32.mrf.mxu3 }
 0x1f8   :  { %v771_v11 = vadd.f32 %v1634_v15, %v770_v4 }
 0x1f9   :  { %v455_v37 = vmax.f32 %v365_v29, 0.0 }
 0x1fa   :  { %v702_v23 = vpop.f32.mrf.mxu1  ;;  %v846_v14 = vmax.f32 %v771_v11, 0.0 }
 0x1fb   :  { %v703_v25 = vadd.f32 %v1634_v15, %v702_v23 }
 0x1fc   :  { %v1038_v26 = vpop.f32.mrf.mxu2 }
 0x1fd   :  { %v819_v30 = vmax.f32 %v703_v25, 0.0  ;;  %v1039_v31 = vadd.f32 %v1767_v17, %v1038_v26 }
 0x1fe   :  { %v366_v33 = vpop.f32.mrf.mxu0 }
 0x1ff   :  { %v868_v34 = vpack.c.bf16 %v819_v30, %v818_v27  ;;  %1182 = vst [vmem:[%s2124_s7 + $0x58] sm:$0xff] %v1039_v31  ;;  %v367_v35 = vadd.f32 %v1374_v28, %v366_v33  ;;  %v772_v13 = vpop.f32.mrf.mxu3 }
 0x200   :  { %v773_v16 = vadd.f32 %v1634_v15, %v772_v13 }
 0x201   :  { %v456_v38 = vmax.f32 %v367_v35, 0.0  ;;  %1341 = vmatmul.msk.bf16.gmra.mxu2 %vm143_vm0, %v868_v34  ;;  %1353 = vmatmul.msk.bf16.gmra.mxu3 %vm143_vm0, %v880_v47 }
 0x202   :  { %v705_v39 = vpop.f32.mrf.mxu1  ;;  %v847_v20 = vmax.f32 %v773_v16, 0.0 }
 0x203   :  { %v496_v41 = vpack.c.bf16 %v456_v38, %v455_v37  ;;  %v706_v48 = vadd.f32 %v1634_v15, %v705_v39 }
 0x204   :  { %v1041_v44 = vpop.f32.mrf.mxu2  ;;  %v882_v21 = vpack.c.bf16 %v847_v20, %v846_v14 }
 0x205   :  { %v1042_v45 = vadd.f32 %v1767_v17, %v1041_v44  ;;  %1310 = vmatmul.msk.bf16.gmra.mxu1 %vm143_vm0, %v496_v41  ;;  %v820_v53 = vmax.f32 %v706_v48, 0.0 }
 0x207   :  { %1183 = vst [vmem:[%s2124_s7 + $0x60] sm:$0xff] %v1042_v45  ;;  %v775_v23 = vpop.f32.mrf.mxu3 }
 0x208   :  { %v776_v30 = vadd.f32 %v1634_v15, %v775_v23 }
 0x20a   :  { %v707_v49 = vpop.f32.mrf.mxu1  ;;  %v848_v34 = vmax.f32 %v776_v30, 0.0 }
 0x20b   :  { %v708_v51 = vadd.f32 %v1634_v15, %v707_v49 }
 0x20c   :  { %v1043_v52 = vpop.f32.mrf.mxu2 }
 0x20d   :  { %v821_v54 = vmax.f32 %v708_v51, 0.0  ;;  %v1044_v55 = vadd.f32 %v1767_v17, %v1043_v52 }
 0x20f   :  { %v869_v56 = vpack.c.bf16 %v821_v54, %v820_v53  ;;  %1184 = vst [vmem:[%s2124_s7 + $0x68] sm:$0xff] %v1044_v55  ;;  %v777_v33 = vpop.f32.mrf.mxu3 }
 0x210   :  { %v778_v35 = vadd.f32 %v1634_v15, %v777_v33 }
 0x211   :  { %1342 = vmatmul.msk.bf16.gmra.mxu2 %vm143_vm0, %v869_v56  ;;  %1354 = vmatmul.msk.bf16.gmra.mxu3 %vm143_vm0, %v881_v1 }
 0x212   :  { %v710_v58 = vpop.f32.mrf.mxu1  ;;  %v849_v38 = vmax.f32 %v778_v35, 0.0 }
 0x213   :  { %v711_v2 = vadd.f32 %v1634_v15, %v710_v58 }
 0x214   :  { %v1046_v62 = vpop.f32.mrf.mxu2  ;;  %v883_v39 = vpack.c.bf16 %v849_v38, %v848_v34 }
 0x215   :  { %v1047_v63 = vadd.f32 %v1767_v17, %v1046_v62  ;;  %v822_v7 = vmax.f32 %v711_v2, 0.0 }
 0x217   :  { %1185 = vst [vmem:[%s2124_s7 + $0x70] sm:$0xff] %v1047_v63  ;;  %v780_v42 = vpop.f32.mrf.mxu3 }
 0x218   :  { %v781_v49 = vadd.f32 %v1634_v15, %v780_v42 }
 0x21a   :  { %v712_v3 = vpop.f32.mrf.mxu1  ;;  %v850_v52 = vmax.f32 %v781_v49, 0.0 }
 0x21b   :  { %v713_v5 = vadd.f32 %v1634_v15, %v712_v3 }
 0x21c   :  { %v1048_v6 = vpop.f32.mrf.mxu2 }
 0x21d   :  { %v823_v8 = vmax.f32 %v713_v5, 0.0  ;;  %v1049_v9 = vadd.f32 %v1767_v17, %v1048_v6 }
 0x21f   :  { %v870_v10 = vpack.c.bf16 %v823_v8, %v822_v7  ;;  %1186 = vst [vmem:[%s2124_s7 + $0x78] sm:$0xff] %v1049_v9  ;;  %v782_v51 = vpop.f32.mrf.mxu3 }
 0x220   :  { %v783_v53 = vadd.f32 %v1634_v15, %v782_v51 }
 0x221   :  { %1343 = vmatmul.msk.bf16.gmra.mxu2 %vm143_vm0, %v870_v10  ;;  %1355 = vmatmul.msk.bf16.gmra.mxu3 %vm143_vm0, %v882_v21 }
 0x222   :  { %v715_v12 = vpop.f32.mrf.mxu1  ;;  %v851_v56 = vmax.f32 %v783_v53, 0.0 }
 0x223   :  { %v716_v32 = vadd.f32 %v1634_v15, %v715_v12  ;;  %v1375_v12 = vld [vmem:[%s2121_s4] ss:$0 sm:$0xff] }
 0x224   :  { %v1051_v18 = vpop.f32.mrf.mxu2  ;;  %v884_v57 = vpack.c.bf16 %v851_v56, %v850_v52 }
 0x225   :  { %v1052_v19 = vadd.f32 %v1767_v17, %v1051_v18  ;;  %v824_v26 = vmax.f32 %v716_v32, 0.0 }
 0x227   :  { %1187 = vst [vmem:[%s2124_s7 + $0x80] sm:$0xff] %v1052_v19 }
 0x228   :  { %v785_v60 = vpop.f32.mrf.mxu3 }
 0x229   :  { %v786_v3 = vadd.f32 %v1634_v15, %v785_v60 }
 0x22a   :  { %v717_v22 = vpop.f32.mrf.mxu1 }
 0x22b   :  { %v718_v24 = vadd.f32 %v1634_v15, %v717_v22  ;;  %v852_v6 = vmax.f32 %v786_v3, 0.0 }
 0x22c   :  { %v1053_v25 = vpop.f32.mrf.mxu2 }
 0x22d   :  { %v825_v27 = vmax.f32 %v718_v24, 0.0  ;;  %v1054_v28 = vadd.f32 %v1767_v17, %v1053_v25 }
 0x22f   :  { %v871_v29 = vpack.c.bf16 %v825_v27, %v824_v26  ;;  %1188 = vst [vmem:[%s2124_s7 + $0x88] sm:$0xff] %v1054_v28 }
 0x230   :  { %v787_v5 = vpop.f32.mrf.mxu3 }
 0x231   :  { %1344 = vmatmul.msk.bf16.gmra.mxu2 %vm143_vm0, %v871_v29  ;;  %1356 = vmatmul.msk.bf16.gmra.mxu3 %vm143_vm0, %v883_v39  ;;  %v788_v7 = vadd.f32 %v1634_v15, %v787_v5 }
 0x232   :  { %v720_v31 = vpop.f32.mrf.mxu1 }
 0x233   :  { %v721_v40 = vadd.f32 %v1634_v15, %v720_v31  ;;  %v853_v10 = vmax.f32 %v788_v7, 0.0 }
 0x234   :  { %v1056_v36 = vpop.f32.mrf.mxu2 }
 0x235   :  { %v1057_v37 = vadd.f32 %v1767_v17, %v1056_v36  ;;  %v826_v45 = vmax.f32 %v721_v40, 0.0  ;;  %v885_v11 = vpack.c.bf16 %v853_v10, %v852_v6 }
 0x237   :  { %1189 = vst [vmem:[%s2124_s7 + $0x90] sm:$0xff] %v1057_v37 }
 0x23a   :  { %v722_v41 = vpop.f32.mrf.mxu1 }
 0x23b   :  { %v723_v43 = vadd.f32 %v1634_v15, %v722_v41 }
 0x23c   :  { %v1058_v44 = vpop.f32.mrf.mxu2 }
 0x23d   :  { %v827_v46 = vmax.f32 %v723_v43, 0.0  ;;  %v1059_v47 = vadd.f32 %v1767_v17, %v1058_v44 }
 0x23f   :  { %v872_v48 = vpack.c.bf16 %v827_v46, %v826_v45  ;;  %1190 = vst [vmem:[%s2124_s7 + $0x98] sm:$0xff] %v1059_v47 }
 0x241   :  { %1345 = vmatmul.msk.bf16.gmra.mxu2 %vm143_vm0, %v872_v48  ;;  %1357 = vmatmul.msk.bf16.gmra.mxu3 %vm143_vm0, %v884_v57 }
 0x242   :  { %v725_v50 = vpop.f32.mrf.mxu1 }
 0x243   :  { %v726_v58 = vadd.f32 %v1634_v15, %v725_v50 }
 0x244   :  { %v1061_v54 = vpop.f32.mrf.mxu2 }
 0x245   :  { %v1062_v55 = vadd.f32 %v1767_v17, %v1061_v54  ;;  %v828_v63 = vmax.f32 %v726_v58, 0.0 }
 0x246   :  { %v1131_v28 = vpop.f32.mrf.mxu3 }
 0x247   :  { %1191 = vst [vmem:[%s2124_s7 + $0xa0] sm:$0xff] %v1062_v55  ;;  %v1132_v34 = vadd.f32 %v1767_v17, %v1131_v28 }
 0x249   :  { %1219 = vst [vmem:[%s2124_s7 + $0x180] sm:$0xff] %v1132_v34 }
 0x24a   :  { %v727_v59 = vpop.f32.mrf.mxu1 }
 0x24b   :  { %v728_v61 = vadd.f32 %v1634_v15, %v727_v59 }
 0x24c   :  { %v1063_v62 = vpop.f32.mrf.mxu2 }
 0x24d   :  { %v829_v0 = vmax.f32 %v728_v61, 0.0  ;;  %v1064_v1 = vadd.f32 %v1767_v17, %v1063_v62 }
 0x24e   :  { %v1133_v37 = vpop.f32.mrf.mxu3 }
 0x24f   :  { %v873_v2 = vpack.c.bf16 %v829_v0, %v828_v63  ;;  %1192 = vst [vmem:[%s2124_s7 + $0xa8] sm:$0xff] %v1064_v1  ;;  %v1134_v39 = vadd.f32 %v1767_v17, %v1133_v37 }
 0x251   :  { %1346 = vmatmul.msk.bf16.gmra.mxu2 %vm143_vm0, %v873_v2  ;;  %1358 = vmatmul.msk.bf16.gmra.mxu3 %vm143_vm0, %v885_v11  ;;  %1220 = vst [vmem:[%s2124_s7 + $0x188] sm:$0xff] %v1134_v39 }
 0x252   :  { %v730_v4 = vpop.f32.mrf.mxu1 }
 0x253   :  { %v731_v13 = vadd.f32 %v1375_v12, %v730_v4 }
 0x254   :  { %v1066_v8 = vpop.f32.mrf.mxu2 }
 0x255   :  { %v1067_v9 = vadd.f32 %v1767_v17, %v1066_v8  ;;  %v830_v15 = vmax.f32 %v731_v13, 0.0 }
 0x257   :  { %1193 = vst [vmem:[%s2124_s7 + $0xb0] sm:$0xff] %v1067_v9 }
 0x25a   :  { %v732_v14 = vpop.f32.mrf.mxu1 }
 0x25b   :  { %v733_v16 = vadd.f32 %v1375_v12, %v732_v14 }
 0x25c   :  { %v1068_v18 = vpop.f32.mrf.mxu2 }
 0x25d   :  { %v831_v19 = vmax.f32 %v733_v16, 0.0  ;;  %v1069_v20 = vadd.f32 %v1767_v17, %v1068_v18 }
 0x25f   :  { %v874_v21 = vpack.c.bf16 %v831_v19, %v830_v15  ;;  %1194 = vst [vmem:[%s2124_s7 + $0xb8] sm:$0xff] %v1069_v20 }
 0x261   :  { %1347 = vmatmul.msk.bf16.gmra.mxu2 %vm143_vm0, %v874_v21 }
 0x262   :  { %v735_v32 = vpop.f32.mrf.mxu1 }
 0x263   :  { %v736_v24 = vadd.f32 %v1375_v12, %v735_v32 }
 0x264   :  { %v1071_v22 = vpop.f32.mrf.mxu2 }
 0x265   :  { %v1072_v23 = vadd.f32 %v1767_v17, %v1071_v22  ;;  %v832_v29 = vmax.f32 %v736_v24, 0.0 }
 0x267   :  { %1195 = vst [vmem:[%s2124_s7 + $0xc0] sm:$0xff] %v1072_v23 }
 0x26a   :  { %v737_v25 = vpop.f32.mrf.mxu1 }
 0x26b   :  { %v738_v26 = vadd.f32 %v1375_v12, %v737_v25 }
 0x26c   :  { %v1073_v27 = vpop.f32.mrf.mxu2 }
 0x26d   :  { %v833_v30 = vmax.f32 %v738_v26, 0.0  ;;  %v1074_v31 = vadd.f32 %v1767_v17, %v1073_v27 }
 0x26f   :  { %v875_v33 = vpack.c.bf16 %v833_v30, %v832_v29  ;;  %1196 = vst [vmem:[%s2124_s7 + $0xc8] sm:$0xff] %v1074_v31 }
 0x271   :  { %1348 = vmatmul.msk.bf16.gmra.mxu2 %vm143_vm0, %v875_v33 }
 0x272   :  { %v740_v35 = vpop.f32.mrf.mxu1 }
 0x273   :  { %v741_v40 = vadd.f32 %v1375_v12, %v740_v35 }
 0x274   :  { %v1076_v36 = vpop.f32.mrf.mxu2  ;;  %v1136_v44 = vpop.f32.mrf.mxu3 }
 0x275   :  { %v1077_v38 = vadd.f32 %v1767_v17, %v1076_v36  ;;  %v834_v45 = vmax.f32 %v741_v40, 0.0  ;;  %v1137_v49 = vadd.f32 %v1767_v17, %v1136_v44 }
 0x277   :  { %1197 = vst [vmem:[%s2124_s7 + $0xd0] sm:$0xff] %v1077_v38 }
 0x278   :  { %1221 = vst [vmem:[%s2124_s7 + $0x190] sm:$0xff] %v1137_v49 }
 0x27a   :  { %v742_v41 = vpop.f32.mrf.mxu1 }
 0x27b   :  { %v743_v42 = vadd.f32 %v1375_v12, %v742_v41 }
 0x27c   :  { %v1078_v43 = vpop.f32.mrf.mxu2  ;;  %v1138_v52 = vpop.f32.mrf.mxu3 }
 0x27d   :  { %v835_v46 = vmax.f32 %v743_v42, 0.0  ;;  %v1079_v47 = vadd.f32 %v1767_v17, %v1078_v43  ;;  %v1139_v54 = vadd.f32 %v1767_v17, %v1138_v52 }
 0x27f   :  { %v876_v48 = vpack.c.bf16 %v835_v46, %v834_v45  ;;  %1198 = vst [vmem:[%s2124_s7 + $0xd8] sm:$0xff] %v1079_v47 }
 0x280   :  { %1222 = vst [vmem:[%s2124_s7 + $0x198] sm:$0xff] %v1139_v54 }
 0x281   :  { %1349 = vmatmul.msk.bf16.gmra.mxu2 %vm143_vm0, %v876_v48 }
 0x282   :  { %v745_v50 = vpop.f32.mrf.mxu1 }
 0x283   :  { %v746_v55 = vadd.f32 %v1375_v12, %v745_v50 }
 0x284   :  { %v1081_v51 = vpop.f32.mrf.mxu2  ;;  %v1141_v59 = vpop.f32.mrf.mxu3 }
 0x285   :  { %v1082_v53 = vadd.f32 %v1767_v17, %v1081_v51  ;;  %v836_v60 = vmax.f32 %v746_v55, 0.0  ;;  %v1142_v0 = vadd.f32 %v1767_v17, %v1141_v59 }
 0x287   :  { %1199 = vst [vmem:[%s2124_s7 + $0xe0] sm:$0xff] %v1082_v53 }
 0x288   :  { %1223 = vst [vmem:[%s2124_s7 + $0x1a0] sm:$0xff] %v1142_v0 }
 0x28a   :  { %v747_v56 = vpop.f32.mrf.mxu1 }
 0x28b   :  { %v748_v57 = vadd.f32 %v1375_v12, %v747_v56 }
 0x28c   :  { %v1083_v58 = vpop.f32.mrf.mxu2  ;;  %v1143_v2 = vpop.f32.mrf.mxu3 }
 0x28d   :  { %v837_v61 = vmax.f32 %v748_v57, 0.0  ;;  %v1084_v62 = vadd.f32 %v1767_v17, %v1083_v58  ;;  %v1144_v4 = vadd.f32 %v1767_v17, %v1143_v2 }
 0x28f   :  { %v877_v63 = vpack.c.bf16 %v837_v61, %v836_v60  ;;  %1200 = vst [vmem:[%s2124_s7 + $0xe8] sm:$0xff] %v1084_v62 }
 0x290   :  { %1224 = vst [vmem:[%s2124_s7 + $0x1a8] sm:$0xff] %v1144_v4 }
 0x291   :  { %1350 = vmatmul.msk.bf16.gmra.mxu2 %vm143_vm0, %v877_v63 }
 0x294   :  { %v1086_v1 = vpop.f32.mrf.mxu2  ;;  %v1146_v6 = vpop.f32.mrf.mxu3 }
 0x295   :  { %v1087_v3 = vadd.f32 %v1767_v17, %v1086_v1  ;;  %v1147_v8 = vadd.f32 %v1767_v17, %v1146_v6 }
 0x297   :  { %1201 = vst [vmem:[%s2124_s7 + $0xf0] sm:$0xff] %v1087_v3 }
 0x298   :  { %1225 = vst [vmem:[%s2124_s7 + $0x1b0] sm:$0xff] %v1147_v8 }
 0x29c   :  { %v1088_v5 = vpop.f32.mrf.mxu2  ;;  %v1148_v10 = vpop.f32.mrf.mxu3 }
 0x29d   :  { %v1089_v7 = vadd.f32 %v1767_v17, %v1088_v5  ;;  %v1149_v12 = vadd.f32 %v1767_v17, %v1148_v10 }
 0x29f   :  { %1202 = vst [vmem:[%s2124_s7 + $0xf8] sm:$0xff] %v1089_v7 }
 0x2a0   :  { %1226 = vst [vmem:[%s2124_s7 + $0x1b8] sm:$0xff] %v1149_v12 }
 0x2a4   :  { %v1091_v9 = vpop.f32.mrf.mxu2  ;;  %v1151_v14 = vpop.f32.mrf.mxu3 }
 0x2a5   :  { %v1092_v11 = vadd.f32 %v1767_v17, %v1091_v9  ;;  %v1152_v18 = vadd.f32 %v1767_v17, %v1151_v14 }
 0x2a7   :  { %1203 = vst [vmem:[%s2124_s7 + $0x100] sm:$0xff] %v1092_v11 }
 0x2a8   :  { %1227 = vst [vmem:[%s2124_s7 + $0x1c0] sm:$0xff] %v1152_v18 }
 0x2ac   :  { %v1093_v13 = vpop.f32.mrf.mxu2  ;;  %v1153_v19 = vpop.f32.mrf.mxu3 }
 0x2ad   :  { %v1094_v16 = vadd.f32 %v1767_v17, %v1093_v13  ;;  %v1154_v21 = vadd.f32 %v1767_v17, %v1153_v19 }
 0x2af   :  { %1204 = vst [vmem:[%s2124_s7 + $0x108] sm:$0xff] %v1094_v16 }
 0x2b0   :  { %1228 = vst [vmem:[%s2124_s7 + $0x1c8] sm:$0xff] %v1154_v21 }
 0x2b4   :  { %v1096_v15 = vpop.f32.mrf.mxu2  ;;  %v1156_v22 = vpop.f32.mrf.mxu3 }
 0x2b5   :  { %v1097_v20 = vadd.f32 %v1767_v17, %v1096_v15  ;;  %v1157_v24 = vadd.f32 %v1767_v17, %v1156_v22 }
 0x2b7   :  { %1205 = vst [vmem:[%s2124_s7 + $0x110] sm:$0xff] %v1097_v20 }
 0x2b8   :  { %1229 = vst [vmem:[%s2124_s7 + $0x1d0] sm:$0xff] %v1157_v24 }
 0x2bc   :  { %v1098_v32 = vpop.f32.mrf.mxu2  ;;  %v1158_v26 = vpop.f32.mrf.mxu3 }
 0x2bd   :  { %v1099_v23 = vadd.f32 %v1767_v17, %v1098_v32  ;;  %v1159_v28 = vadd.f32 %v1767_v17, %v1158_v26 }
 0x2bf   :  { %1206 = vst [vmem:[%s2124_s7 + $0x118] sm:$0xff] %v1099_v23 }
 0x2c0   :  { %1230 = vst [vmem:[%s2124_s7 + $0x1d8] sm:$0xff] %v1159_v28 }
 0x2c4   :  { %v1101_v25 = vpop.f32.mrf.mxu2  ;;  %v1161_v30 = vpop.f32.mrf.mxu3 }
 0x2c5   :  { %v1102_v27 = vadd.f32 %v1767_v17, %v1101_v25  ;;  %v1162_v33 = vadd.f32 %v1767_v17, %v1161_v30 }
 0x2c7   :  { %1207 = vst [vmem:[%s2124_s7 + $0x120] sm:$0xff] %v1102_v27 }
 0x2c8   :  { %1231 = vst [vmem:[%s2124_s7 + $0x1e0] sm:$0xff] %v1162_v33 }
 0x2cc   :  { %v1103_v29 = vpop.f32.mrf.mxu2  ;;  %v1163_v35 = vpop.f32.mrf.mxu3 }
 0x2cd   :  { %v1104_v31 = vadd.f32 %v1767_v17, %v1103_v29  ;;  %v1164_v37 = vadd.f32 %v1767_v17, %v1163_v35 }
 0x2cf   :  { %1208 = vst [vmem:[%s2124_s7 + $0x128] sm:$0xff] %v1104_v31 }
 0x2d0   :  { %1232 = vst [vmem:[%s2124_s7 + $0x1e8] sm:$0xff] %v1164_v37 }
 0x2d4   :  { %v1106_v34 = vpop.f32.mrf.mxu2  ;;  %v1166_v39 = vpop.f32.mrf.mxu3 }
 0x2d5   :  { %v1107_v36 = vadd.f32 %v1767_v17, %v1106_v34  ;;  %v1167_v41 = vadd.f32 %v1767_v17, %v1166_v39 }
 0x2d7   :  { %1209 = vst [vmem:[%s2124_s7 + $0x130] sm:$0xff] %v1107_v36 }
 0x2d8   :  { %1233 = vst [vmem:[%s2124_s7 + $0x1f0] sm:$0xff] %v1167_v41 }
 0x2dc   :  { %v1108_v38 = vpop.f32.mrf.mxu2  ;;  %v1168_v43 = vpop.f32.mrf.mxu3 }
 0x2dd   :  { %v1109_v40 = vadd.f32 %v1767_v17, %v1108_v38  ;;  %v1169_v45 = vadd.f32 %v1767_v17, %v1168_v43 }
 0x2df   :  { %1210 = vst [vmem:[%s2124_s7 + $0x138] sm:$0xff] %v1109_v40 }
 0x2e0   :  { %1234 = vst [vmem:[%s2124_s7 + $0x1f8] sm:$0xff] %v1169_v45 }
 0x2e4   :  { %v1111_v42 = vpop.f32.mrf.mxu2 }
 0x2e5   :  { %v1112_v44 = vadd.f32 %v1767_v17, %v1111_v42 }
 0x2e7   :  { %1211 = vst [vmem:[%s2124_s7 + $0x140] sm:$0xff] %v1112_v44 }
 0x2ec   :  { %v1113_v46 = vpop.f32.mrf.mxu2 }
 0x2ed   :  { %v1114_v47 = vadd.f32 %v1767_v17, %v1113_v46 }
 0x2ef   :  { %1212 = vst [vmem:[%s2124_s7 + $0x148] sm:$0xff] %v1114_v47 }
 0x2f4   :  { %v1116_v48 = vpop.f32.mrf.mxu2 }
 0x2f5   :  { %v1117_v49 = vadd.f32 %v1767_v17, %v1116_v48 }
 0x2f7   :  { %1213 = vst [vmem:[%s2124_s7 + $0x150] sm:$0xff] %v1117_v49 }
 0x2fc   :  { %v1118_v50 = vpop.f32.mrf.mxu2 }
 0x2fd   :  { %v1119_v51 = vadd.f32 %v1767_v17, %v1118_v50 }
 0x2ff   :  { %1214 = vst [vmem:[%s2124_s7 + $0x158] sm:$0xff] %v1119_v51 }
 0x304   :  { %v1121_v52 = vpop.f32.mrf.mxu2 }
 0x305   :  { %v1122_v53 = vadd.f32 %v1767_v17, %v1121_v52 }
 0x307   :  { %1215 = vst [vmem:[%s2124_s7 + $0x160] sm:$0xff] %v1122_v53 }
 0x30c   :  { %v1123_v54 = vpop.f32.mrf.mxu2 }
 0x30d   :  { %v1124_v55 = vadd.f32 %v1767_v17, %v1123_v54 }
 0x30f   :  { %1216 = vst [vmem:[%s2124_s7 + $0x168] sm:$0xff] %v1124_v55 }
 0x314   :  { %v1126_v56 = vpop.f32.mrf.mxu2 }
 0x315   :  { %v1127_v57 = vadd.f32 %v1767_v17, %v1126_v56 }
 0x317   :  { %1217 = vst [vmem:[%s2124_s7 + $0x170] sm:$0xff] %v1127_v57 }
 0x31c   :  { %v1128_v58 = vpop.f32.mrf.mxu2 }
 0x31d   :  { %v1129_v59 = vadd.f32 %v1767_v17, %v1128_v58 }
 0x31f   :  { %1218 = vst [vmem:[%s2124_s7 + $0x178] sm:$0xff] %v1129_v59 }

</bundles_post_ra>
